<compile_context>
chip_gen: v5e
topology: v5e:2x2
jax: 0.10.0
libtpu: 0.0.40
codegen_flags: <defaults>
</compile_context>

<pallas_src>
import functools

import jax
import jax.numpy as jnp
from jax.experimental import pallas as pl
from jax.experimental.pallas import tpu as pltpu

EPS = 1e-5


def _round_up(n, m):
    return ((n + m - 1) // m) * m


def _layernorm(x, gamma, beta):
    # Centered two-pass variance (reference-faithful, cancellation-safe).
    mu = jnp.mean(x, axis=-1, keepdims=True)
    xc = x - mu
    var = jnp.mean(xc * xc, axis=-1, keepdims=True)
    return xc * jax.lax.rsqrt(var + EPS) * gamma + beta


def ponder_kernel(x_ref,
                  ln1g_ref, ln1b_ref, w1_ref, b1_ref, w2_ref, b2_ref,
                  lnhg_ref, lnhb_ref, wh_ref, bh_ref,
                  y_ref, logit_ref, *, gelu_bf16):
    x = x_ref[...]                                            # (TM, D) f32

    # ---- block: pre-norm residual MLP (matmuls bf16, f32 accumulation) ----
    xn = _layernorm(x, ln1g_ref[...], ln1b_ref[...])
    h = jnp.dot(xn.astype(jnp.bfloat16), w1_ref[...],
                preferred_element_type=jnp.float32) + b1_ref[...]
    if gelu_bf16:
        # v6e / v7x: bf16 VPU+EUP path, halves the live h buffer.
        h = jax.nn.gelu(h.astype(jnp.bfloat16), approximate=True)
    else:
        # v5e: no bf16 VPU/EUP — keep the elementwise math in f32.
        h = jax.nn.gelu(h, approximate=True).astype(jnp.bfloat16)
    y = x + jnp.dot(h, w2_ref[...],
                    preferred_element_type=jnp.float32) + b2_ref[...]
    y_ref[...] = y

    # ---- to_halt_logits: LayerNorm -> row-dot with wh (VPU/XLU, no MXU) ----
    yn = _layernorm(y, lnhg_ref[...], lnhb_ref[...])
    logits = jnp.sum(yn * wh_ref[...], axis=-1) + bh_ref[0]   # (TM,)
    logit_ref[0, 0, :] = logits                               # lane-dense store


def _tpu_config():
    """Generation-specific tiling / VMEM / dtype policy."""
    kind = ""
    try:
        kind = jax.devices()[0].device_kind.lower()
    except Exception:
        pass
    if "v5" in kind:
        return dict(tile_rows=512, vmem=100 * 1024 * 1024,
                    gelu_bf16=False, two_tc=False)
    if "v6" in kind:
        return dict(tile_rows=512, vmem=100 * 1024 * 1024,
                    gelu_bf16=True, two_tc=False)
    if "v7" in kind:
        return dict(tile_rows=256, vmem=48 * 1024 * 1024,
                    gelu_bf16=True, two_tc=True)
    # Unknown generation: conservative sizing that fits every chip's VMEM.
    return dict(tile_rows=256, vmem=48 * 1024 * 1024,
                gelu_bf16=True, two_tc=False)


def _vmem_estimate(tile_rows, D, H, x_bufs):
    weights = 2 * D * H * 2                        # w1 + w2, bf16, single-buffered
    vecs = (7 * D + H) * 4                         # LN params, biases, wh row
    act_bufs = (x_bufs + 2) * tile_rows * D * 4    # x bufs + y double buffer
    inter = tile_rows * H * 6                      # h: f32 accum + bf16 copy
    logits = 2 * tile_rows * 4
    return weights + vecs + act_bufs + inter + logits


def ponder_block_wrapper(x, params, *, tile_rows=None):
    """x: (B, S, D) float32. Returns (y (B,S,D), halting_logits (B,S))."""
    B, S, D = x.shape
    H = params["w1"].shape[1]
    N = B * S

    cfg = _tpu_config()
    if tile_rows is None:
        tile_rows = cfg["tile_rows"]
    # Row tile: multiple of 128, clamped so tiny inputs do not over-pad.
    tile_rows = max(128, min(_round_up(tile_rows, 128), _round_up(N, 128)))
    # v7x: a 1-tile grid leaves one of the 2 TensorCores idle — split it.
    if cfg["two_tc"] and N > 128 and pl.cdiv(N, tile_rows) < 2:
        tile_rows = 128
    # Triple-buffer the x stream when there are enough row tiles to pipeline.
    x_bufs = 3 if pl.cdiv(N, tile_rows) >= 3 else 2
    # Keep the working set well under the generation's VMEM limit.
    while tile_rows > 128 and \
            _vmem_estimate(tile_rows, D, H, x_bufs) > 0.7 * cfg["vmem"]:
        tile_rows = max(128, _round_up(tile_rows // 2, 128))

    num_tiles = pl.cdiv(N, tile_rows)

    # No host-side pad of x / slice of y: Pallas handles the partial final
    # block (its garbage rows are row-independent; their writes are dropped).
    x2 = x.reshape(N, D).astype(jnp.float32)

    # bf16 weights for the MXU (halves weight DMA/VMEM, ~2-3x MXU throughput).
    w1 = params["w1"].astype(jnp.bfloat16)
    w2 = params["w2"].astype(jnp.bfloat16)
    wh_row = params["wh"].reshape(1, D).astype(jnp.float32)   # (1, D) row
    bh = params["bh"].reshape(1).astype(jnp.float32)          # SMEM scalar

    if x_bufs == 3:
        x_spec = pl.BlockSpec((tile_rows, D), lambda i: (i, 0),
                              pipeline_mode=pl.Buffered(3))
    else:
        x_spec = pl.BlockSpec((tile_rows, D), lambda i: (i, 0))
    y_spec = pl.BlockSpec((tile_rows, D), lambda i: (i, 0))

    def const_spec(shape):
        # Grid-invariant operand: single-buffered (no pointless double buffer).
        return pl.BlockSpec(shape, lambda i: (0, 0),
                            pipeline_mode=pl.Buffered(1))

    in_specs = [
        x_spec,                                               # x
        const_spec((1, D)),                                   # ln1 gamma
        const_spec((1, D)),                                   # ln1 beta
        const_spec((D, H)),                                   # w1 (bf16)
        const_spec((1, H)),                                   # b1
        const_spec((H, D)),                                   # w2 (bf16)
        const_spec((1, D)),                                   # b2
        const_spec((1, D)),                                   # lnh gamma
        const_spec((1, D)),                                   # lnh beta
        const_spec((1, D)),                                   # wh row
        pl.BlockSpec(memory_space=pltpu.MemorySpace.SMEM),    # bh scalar
    ]
    out_specs = [
        y_spec,                                               # y (N, D)
        pl.BlockSpec((1, 1, tile_rows), lambda i: (i, 0, 0)),  # halting logits
    ]

    kernel = functools.partial(ponder_kernel, gelu_bf16=cfg["gelu_bf16"])

    y2, logits3 = pl.pallas_call(
        kernel,
        out_shape=(jax.ShapeDtypeStruct((N, D), jnp.float32),
                   jax.ShapeDtypeStruct((num_tiles, 1, tile_rows), jnp.float32)),
        grid_spec=pltpu.PrefetchScalarGridSpec(
            num_scalar_prefetch=0,
            grid=(num_tiles,),
            in_specs=in_specs,
            out_specs=out_specs,
        ),
        compiler_params=pltpu.CompilerParams(
            dimension_semantics=("parallel",),
            vmem_limit_bytes=cfg["vmem"],
        ),
    )(x2,
      params["ln1_g"], params["ln1_b"],
      w1, params["b1"], w2, params["b2"],
      params["lnh_g"], params["lnh_b"],
      wh_row, bh)

    y = y2.reshape(B, S, D)
    # Only the small logits slab is padded; slice off the tail rows.
    halting_logits = logits3.reshape(num_tiles * tile_rows)[:N].reshape(B, S)
    return y, halting_logits


def _reference(x, p):
    def ln(v, g, b):
        mu = v.mean(-1, keepdims=True)
        var = ((v - mu) ** 2).mean(-1, keepdims=True)
        return (v - mu) / jnp.sqrt(var + EPS) * g + b
    xn = ln(x, p["ln1_g"], p["ln1_b"])
    h = jax.nn.gelu(xn @ p["w1"] + p["b1"], approximate=True)
    y = x + h @ p["w2"] + p["b2"]
    yn = ln(y, p["lnh_g"], p["lnh_b"])
    logits = (yn @ p["wh"] + p["bh"])[..., 0]
    return y, logits


if __name__ == "__main__":
    B, S, D, H = 2, 8, 32, 64

    key = jax.random.PRNGKey(0)
    k = jax.random.split(key, 8)
    params = {
        "ln1_g": jnp.ones((1, D), jnp.float32),
        "ln1_b": jnp.zeros((1, D), jnp.float32),
        "w1": jax.random.normal(k[0], (D, H), jnp.float32) * 0.05,
        "b1": jax.random.normal(k[1], (1, H), jnp.float32) * 0.01,
        "w2": jax.random.normal(k[2], (H, D), jnp.float32) * 0.05,
        "b2": jax.random.normal(k[3], (1, D), jnp.float32) * 0.01,
        "lnh_g": jnp.ones((1, D), jnp.float32),
        "lnh_b": jnp.zeros((1, D), jnp.float32),
        "wh": jax.random.normal(k[4], (D, 1), jnp.float32) * 0.05,
        "bh": jax.random.normal(k[5], (1, 1), jnp.float32) * 0.01,
    }
    x = jax.random.normal(k[6], (B, S, D), jnp.float32)

    y, halting_logits = jax.jit(ponder_block_wrapper)(x, params)
    jax.block_until_ready((y, halting_logits))

    y_ref, l_ref = _reference(x, params)
    assert y.shape == (B, S, D) and halting_logits.shape == (B, S)
    # bf16 matmul operands => relaxed tolerance vs. the pure-f32 reference.
    assert jnp.allclose(y, y_ref, atol=2e-2, rtol=2e-2)
    assert jnp.allclose(halting_logits, l_ref, atol=2e-2, rtol=2e-2)

    print("KERNEL_OK")
</pallas_src>

<mosaic_0001>
module attributes {stable_mosaic.version = 11 : i64} {
  func.func @ponder_kernel(%arg0: i32, %arg1: memref<128x32xf32, #tpu.memory_space<vmem>>, %arg2: memref<1x32xf32, #tpu.memory_space<vmem>>, %arg3: memref<1x32xf32, #tpu.memory_space<vmem>>, %arg4: memref<32x64xbf16, #tpu.memory_space<vmem>>, %arg5: memref<1x64xf32, #tpu.memory_space<vmem>>, %arg6: memref<64x32xbf16, #tpu.memory_space<vmem>>, %arg7: memref<1x32xf32, #tpu.memory_space<vmem>>, %arg8: memref<1x32xf32, #tpu.memory_space<vmem>>, %arg9: memref<1x32xf32, #tpu.memory_space<vmem>>, %arg10: memref<1x32xf32, #tpu.memory_space<vmem>>, %arg11: memref<1xf32, #tpu.memory_space<smem>>, %arg12: memref<128x32xf32, #tpu.memory_space<vmem>>, %arg13: memref<1x1x128xf32, #tpu.memory_space<vmem>>) attributes {dimension_semantics = [#tpu.dimension_semantics<parallel>], iteration_bounds = array<i64: 1>, scalar_prefetch = 0 : i64, scratch_operands = 0 : i64, tpu.core_type = #tpu.core_type<tc>, window_params = [{transform_indices = @transform_0, window_bounds = array<i64: 128, 32>}, {pipeline_mode = #tpu.pipeline_mode<synchronous>, transform_indices = @transform_1, window_bounds = array<i64: 1, 32>}, {pipeline_mode = #tpu.pipeline_mode<synchronous>, transform_indices = @transform_2, window_bounds = array<i64: 1, 32>}, {pipeline_mode = #tpu.pipeline_mode<synchronous>, transform_indices = @transform_3, window_bounds = array<i64: 32, 64>}, {pipeline_mode = #tpu.pipeline_mode<synchronous>, transform_indices = @transform_4, window_bounds = array<i64: 1, 64>}, {pipeline_mode = #tpu.pipeline_mode<synchronous>, transform_indices = @transform_5, window_bounds = array<i64: 64, 32>}, {pipeline_mode = #tpu.pipeline_mode<synchronous>, transform_indices = @transform_6, window_bounds = array<i64: 1, 32>}, {pipeline_mode = #tpu.pipeline_mode<synchronous>, transform_indices = @transform_7, window_bounds = array<i64: 1, 32>}, {pipeline_mode = #tpu.pipeline_mode<synchronous>, transform_indices = @transform_8, window_bounds = array<i64: 1, 32>}, {pipeline_mode = #tpu.pipeline_mode<synchronous>, transform_indices = @transform_9, window_bounds = array<i64: 1, 32>}, {transform_indices = @transform_10, window_bounds = array<i64: 1>}, {transform_indices = @transform_11, window_bounds = array<i64: 128, 32>}, {transform_indices = @transform_12, window_bounds = array<i64: 1, 1, 128>}]} {
    %c0 = arith.constant 0 : index
    %c0_0 = arith.constant 0 : index
    %0 = vector.load %arg1[%c0, %c0_0] : memref<128x32xf32, #tpu.memory_space<vmem>>, vector<128x32xf32>
    %c0_1 = arith.constant 0 : index
    %c0_2 = arith.constant 0 : index
    %1 = vector.load %arg2[%c0_1, %c0_2] : memref<1x32xf32, #tpu.memory_space<vmem>>, vector<1x32xf32>
    %c0_3 = arith.constant 0 : index
    %c0_4 = arith.constant 0 : index
    %2 = vector.load %arg3[%c0_3, %c0_4] : memref<1x32xf32, #tpu.memory_space<vmem>>, vector<1x32xf32>
    %cst = arith.constant dense<0.000000e+00> : vector<128xf32>
    %3 = vector.multi_reduction <add>, %0, %cst [1] : vector<128x32xf32> to vector<128xf32>
    %4 = vector.shape_cast %3 : vector<128xf32> to vector<128x1xf32>
    %cst_5 = arith.constant 3.200000e+01 : f32
    %5 = vector.broadcast %cst_5 : f32 to vector<128x1xf32>
    %6 = arith.divf %4, %5 : vector<128x1xf32>
    %7 = vector.broadcast %6 : vector<128x1xf32> to vector<128x32xf32>
    %8 = arith.subf %0, %7 : vector<128x32xf32>
    %9 = arith.mulf %8, %8 : vector<128x32xf32>
    %cst_6 = arith.constant dense<0.000000e+00> : vector<128xf32>
    %10 = vector.multi_reduction <add>, %9, %cst_6 [1] : vector<128x32xf32> to vector<128xf32>
    %11 = vector.shape_cast %10 : vector<128xf32> to vector<128x1xf32>
    %cst_7 = arith.constant 3.200000e+01 : f32
    %12 = vector.broadcast %cst_7 : f32 to vector<128x1xf32>
    %13 = arith.divf %11, %12 : vector<128x1xf32>
    %cst_8 = arith.constant 9.99999974E-6 : f32
    %14 = vector.broadcast %cst_8 : f32 to vector<128x1xf32>
    %15 = arith.addf %13, %14 : vector<128x1xf32>
    %16 = math.rsqrt %15 : vector<128x1xf32>
    %17 = vector.broadcast %16 : vector<128x1xf32> to vector<128x32xf32>
    %18 = arith.mulf %8, %17 : vector<128x32xf32>
    %19 = vector.broadcast %1 : vector<1x32xf32> to vector<128x32xf32>
    %20 = arith.mulf %18, %19 : vector<128x32xf32>
    %21 = vector.broadcast %2 : vector<1x32xf32> to vector<128x32xf32>
    %22 = arith.addf %20, %21 : vector<128x32xf32>
    %23 = arith.truncf %22 : vector<128x32xf32> to vector<128x32xbf16>
    %c0_9 = arith.constant 0 : index
    %c0_10 = arith.constant 0 : index
    %24 = vector.load %arg4[%c0_9, %c0_10] : memref<32x64xbf16, #tpu.memory_space<vmem>>, vector<32x64xbf16>
    %cst_11 = arith.constant dense<0.000000e+00> : vector<128x64xf32>
    %25 = tpu.matmul %23, %24, %cst_11 {dimension_numbers = #tpu.dot_dimension_numbers<[1], [0], [0], [1], [0, 0, 1, 1], [], []>} : vector<128x32xbf16>, vector<32x64xbf16>, vector<128x64xf32> -> vector<128x64xf32>
    %c0_12 = arith.constant 0 : index
    %c0_13 = arith.constant 0 : index
    %26 = vector.load %arg5[%c0_12, %c0_13] : memref<1x64xf32, #tpu.memory_space<vmem>>, vector<1x64xf32>
    %27 = vector.broadcast %26 : vector<1x64xf32> to vector<128x64xf32>
    %28 = arith.addf %25, %27 : vector<128x64xf32>
    %29 = arith.truncf %28 : vector<128x64xf32> to vector<128x64xbf16>
    %30 = arith.mulf %29, %29 : vector<128x64xbf16>
    %31 = arith.mulf %29, %30 : vector<128x64xbf16>
    %cst_14 = arith.constant 4.467770e-02 : bf16
    %32 = vector.broadcast %cst_14 : bf16 to vector<128x64xbf16>
    %33 = arith.mulf %32, %31 : vector<128x64xbf16>
    %34 = arith.addf %29, %33 : vector<128x64xbf16>
    %cst_15 = arith.constant 7.968750e-01 : bf16
    %35 = vector.broadcast %cst_15 : bf16 to vector<128x64xbf16>
    %36 = arith.mulf %35, %34 : vector<128x64xbf16>
    %37 = math.tanh %36 : vector<128x64xbf16>
    %cst_16 = arith.constant 1.000000e+00 : bf16
    %38 = vector.broadcast %cst_16 : bf16 to vector<128x64xbf16>
    %39 = arith.addf %38, %37 : vector<128x64xbf16>
    %cst_17 = arith.constant 5.000000e-01 : bf16
    %40 = vector.broadcast %cst_17 : bf16 to vector<128x64xbf16>
    %41 = arith.mulf %40, %39 : vector<128x64xbf16>
    %42 = arith.mulf %29, %41 : vector<128x64xbf16>
    %c0_18 = arith.constant 0 : index
    %c0_19 = arith.constant 0 : index
    %43 = vector.load %arg6[%c0_18, %c0_19] : memref<64x32xbf16, #tpu.memory_space<vmem>>, vector<64x32xbf16>
    %cst_20 = arith.constant dense<0.000000e+00> : vector<128x32xf32>
    %44 = tpu.matmul %42, %43, %cst_20 {dimension_numbers = #tpu.dot_dimension_numbers<[1], [0], [0], [1], [0, 0, 1, 1], [], []>} : vector<128x64xbf16>, vector<64x32xbf16>, vector<128x32xf32> -> vector<128x32xf32>
    %45 = arith.addf %0, %44 : vector<128x32xf32>
    %c0_21 = arith.constant 0 : index
    %c0_22 = arith.constant 0 : index
    %46 = vector.load %arg7[%c0_21, %c0_22] : memref<1x32xf32, #tpu.memory_space<vmem>>, vector<1x32xf32>
    %47 = vector.broadcast %46 : vector<1x32xf32> to vector<128x32xf32>
    %48 = arith.addf %45, %47 : vector<128x32xf32>
    %c0_23 = arith.constant 0 : index
    %c0_24 = arith.constant 0 : index
    %49 = vector.load %arg12[%c0_23, %c0_24] : memref<128x32xf32, #tpu.memory_space<vmem>>, vector<128x32xf32>
    tpu.vector_store %arg12[%c0_23, %c0_24], %48 {strides = array<i32>} : memref<128x32xf32, #tpu.memory_space<vmem>>, vector<128x32xf32>,
    %c0_25 = arith.constant 0 : index
    %c0_26 = arith.constant 0 : index
    %50 = vector.load %arg8[%c0_25, %c0_26] : memref<1x32xf32, #tpu.memory_space<vmem>>, vector<1x32xf32>
    %c0_27 = arith.constant 0 : index
    %c0_28 = arith.constant 0 : index
    %51 = vector.load %arg9[%c0_27, %c0_28] : memref<1x32xf32, #tpu.memory_space<vmem>>, vector<1x32xf32>
    %cst_29 = arith.constant dense<0.000000e+00> : vector<128xf32>
    %52 = vector.multi_reduction <add>, %48, %cst_29 [1] : vector<128x32xf32> to vector<128xf32>
    %53 = vector.shape_cast %52 : vector<128xf32> to vector<128x1xf32>
    %cst_30 = arith.constant 3.200000e+01 : f32
    %54 = vector.broadcast %cst_30 : f32 to vector<128x1xf32>
    %55 = arith.divf %53, %54 : vector<128x1xf32>
    %56 = vector.broadcast %55 : vector<128x1xf32> to vector<128x32xf32>
    %57 = arith.subf %48, %56 : vector<128x32xf32>
    %58 = arith.mulf %57, %57 : vector<128x32xf32>
    %cst_31 = arith.constant dense<0.000000e+00> : vector<128xf32>
    %59 = vector.multi_reduction <add>, %58, %cst_31 [1] : vector<128x32xf32> to vector<128xf32>
    %60 = vector.shape_cast %59 : vector<128xf32> to vector<128x1xf32>
    %cst_32 = arith.constant 3.200000e+01 : f32
    %61 = vector.broadcast %cst_32 : f32 to vector<128x1xf32>
    %62 = arith.divf %60, %61 : vector<128x1xf32>
    %cst_33 = arith.constant 9.99999974E-6 : f32
    %63 = vector.broadcast %cst_33 : f32 to vector<128x1xf32>
    %64 = arith.addf %62, %63 : vector<128x1xf32>
    %65 = math.rsqrt %64 : vector<128x1xf32>
    %66 = vector.broadcast %65 : vector<128x1xf32> to vector<128x32xf32>
    %67 = arith.mulf %57, %66 : vector<128x32xf32>
    %68 = vector.broadcast %50 : vector<1x32xf32> to vector<128x32xf32>
    %69 = arith.mulf %67, %68 : vector<128x32xf32>
    %70 = vector.broadcast %51 : vector<1x32xf32> to vector<128x32xf32>
    %71 = arith.addf %69, %70 : vector<128x32xf32>
    %c0_34 = arith.constant 0 : index
    %c0_35 = arith.constant 0 : index
    %72 = vector.load %arg10[%c0_34, %c0_35] : memref<1x32xf32, #tpu.memory_space<vmem>>, vector<1x32xf32>
    %73 = vector.broadcast %72 : vector<1x32xf32> to vector<128x32xf32>
    %74 = arith.mulf %71, %73 : vector<128x32xf32>
    %cst_36 = arith.constant dense<0.000000e+00> : vector<128xf32>
    %75 = vector.multi_reduction <add>, %74, %cst_36 [1] : vector<128x32xf32> to vector<128xf32>
    %c0_37 = arith.constant 0 : index
    %76 = memref.load %arg11[%c0_37] : memref<1xf32, #tpu.memory_space<smem>>
    %77 = vector.broadcast %76 : f32 to vector<128xf32>
    %78 = arith.addf %75, %77 : vector<128xf32>
    %c0_38 = arith.constant 0 : index
    %c0_39 = arith.constant 0 : index
    %c0_40 = arith.constant 0 : index
    %79 = vector.load %arg13[%c0_38, %c0_39, %c0_40] : memref<1x1x128xf32, #tpu.memory_space<vmem>>, vector<1x1x128xf32>
    %80 = vector.shape_cast %79 : vector<1x1x128xf32> to vector<128xf32>
    %81 = vector.shape_cast %78 : vector<128xf32> to vector<1x1x128xf32>
    tpu.vector_store %arg13[%c0_38, %c0_39, %c0_40], %81 {strides = array<i32>} : memref<1x1x128xf32, #tpu.memory_space<vmem>>, vector<1x1x128xf32>,
    return
  }
  func.func @transform_0(%arg0: i32) -> (i32, i32) {
    %c0_i32 = arith.constant 0 : i32
    %c0_i32_0 = arith.constant 0 : i32
    return %arg0, %c0_i32 : i32, i32
  }
  func.func @transform_1(%arg0: i32) -> (i32, i32) {
    %c0_i32 = arith.constant 0 : i32
    %c0_i32_0 = arith.constant 0 : i32
    %c0_i32_1 = arith.constant 0 : i32
    return %c0_i32, %c0_i32_0 : i32, i32
  }
  func.func @transform_2(%arg0: i32) -> (i32, i32) {
    %c0_i32 = arith.constant 0 : i32
    %c0_i32_0 = arith.constant 0 : i32
    %c0_i32_1 = arith.constant 0 : i32
    return %c0_i32, %c0_i32_0 : i32, i32
  }
  func.func @transform_3(%arg0: i32) -> (i32, i32) {
    %c0_i32 = arith.constant 0 : i32
    %c0_i32_0 = arith.constant 0 : i32
    %c0_i32_1 = arith.constant 0 : i32
    return %c0_i32, %c0_i32_0 : i32, i32
  }
  func.func @transform_4(%arg0: i32) -> (i32, i32) {
    %c0_i32 = arith.constant 0 : i32
    %c0_i32_0 = arith.constant 0 : i32
    %c0_i32_1 = arith.constant 0 : i32
    return %c0_i32, %c0_i32_0 : i32, i32
  }
  func.func @transform_5(%arg0: i32) -> (i32, i32) {
    %c0_i32 = arith.constant 0 : i32
    %c0_i32_0 = arith.constant 0 : i32
    %c0_i32_1 = arith.constant 0 : i32
    return %c0_i32, %c0_i32_0 : i32, i32
  }
  func.func @transform_6(%arg0: i32) -> (i32, i32) {
    %c0_i32 = arith.constant 0 : i32
    %c0_i32_0 = arith.constant 0 : i32
    %c0_i32_1 = arith.constant 0 : i32
    return %c0_i32, %c0_i32_0 : i32, i32
  }
  func.func @transform_7(%arg0: i32) -> (i32, i32) {
    %c0_i32 = arith.constant 0 : i32
    %c0_i32_0 = arith.constant 0 : i32
    %c0_i32_1 = arith.constant 0 : i32
    return %c0_i32, %c0_i32_0 : i32, i32
  }
  func.func @transform_8(%arg0: i32) -> (i32, i32) {
    %c0_i32 = arith.constant 0 : i32
    %c0_i32_0 = arith.constant 0 : i32
    %c0_i32_1 = arith.constant 0 : i32
    return %c0_i32, %c0_i32_0 : i32, i32
  }
  func.func @transform_9(%arg0: i32) -> (i32, i32) {
    %c0_i32 = arith.constant 0 : i32
    %c0_i32_0 = arith.constant 0 : i32
    %c0_i32_1 = arith.constant 0 : i32
    return %c0_i32, %c0_i32_0 : i32, i32
  }
  func.func @transform_10(%arg0: i32) -> i32 {
    %c0_i32 = arith.constant 0 : i32
    %c0_i32_0 = arith.constant 0 : i32
    return %c0_i32 : i32
  }
  func.func @transform_11(%arg0: i32) -> (i32, i32) {
    %c0_i32 = arith.constant 0 : i32
    %c0_i32_0 = arith.constant 0 : i32
    return %arg0, %c0_i32 : i32, i32
  }
  func.func @transform_12(%arg0: i32) -> (i32, i32, i32) {
    %c0_i32 = arith.constant 0 : i32
    %c0_i32_0 = arith.constant 0 : i32
    %c0_i32_1 = arith.constant 0 : i32
    return %arg0, %c0_i32, %c0_i32_0 : i32, i32, i32
  }
}

</mosaic_0001>

<bundles_post_ra>
// kernel: ponder_block_wrapper.1
= control target key start
LH: loop header
LB: loop body
LE: loop exit
PB: predicated region body
PF: predicated region fallthrough
CT: control target
= control target key end

     0   :  { %vm61_vm0 = vcmask 261120   ;;  %s3047_s0 = inlined_call_operand.vmem [shape: f32[16,32], index: 0, kind: input, shape index: {}]   ;;  %s3048_s1 = inlined_call_operand.vmem [shape: f32[1,32], index: 1, kind: input, shape index: {}]   ;;  %s3049_s2 = inlined_call_operand.vmem [shape: f32[1,32], index: 2, kind: input, shape index: {}]   ;;  %s3050_s3 = inlined_call_operand.vmem [shape: bf16[32,64], index: 3, kind: input, shape index: {}]   ;;  %s3051_s4 = inlined_call_operand.vmem [shape: f32[1,64], index: 4, kind: input, shape index: {}]   ;;  %s3052_s5 = inlined_call_operand.vmem [shape: bf16[64,32], index: 5, kind: input, shape index: {}]   ;;  %s3053_s6 = inlined_call_operand.vmem [shape: f32[1,32], index: 6, kind: input, shape index: {}]   ;;  %s3054_s7 = inlined_call_operand.vmem [shape: f32[1,32], index: 7, kind: input, shape index: {}]   ;;  %s3055_s8 = inlined_call_operand.vmem [shape: f32[1,32], index: 8, kind: input, shape index: {}]   ;;  %s3056_s9 = inlined_call_operand.vmem [shape: f32[1,32], index: 9, kind: input, shape index: {}]   ;;  %s3057_s10 = inlined_call_operand.<no memory space> [shape: f32[1], index: 10, kind: input, shape index: {}]   ;;  %s3058_s11 = inlined_call_operand.hbm [shape: f32[16,32], index: 11, kind: output, shape index: {0}]   ;;  %s3059_s12 = inlined_call_operand.vmem [shape: f32[1,1,128], index: 12, kind: output, shape index: {1}]  }
   0x1   :  { %v45_v0 = vld [vmem:[%s3047_s0 + $0x10] sm:$0xff]  ;;  %v43_v1 = vld [vmem:[%s3047_s0] sm:$0xff]  ;;  %v46_v5 = vld [vmem:[%s3047_s0 + $0x18] sm:$0xff] }
   0x2   :  { %v68_v2 = vsel %vm61_vm0, %v45_v0, 0.0  ;;  %v62_v3 = vsel %vm61_vm0, %v43_v1, 0.0  ;;  %v2022_v4 = vld [vmem:[%s3047_s0 + $0x20] sm:$0xff] }
   0x3   :  { %69 = vadd.xlane.f32.xlu1 %v68_v2  ;;  %63 = vadd.xlane.f32.xlu0 %v62_v3  ;;  %v74_v6 = vsel %vm61_vm0, %v2022_v4, 0.0 }
   0x4   :  { %19 = vsyncpa [#allocation4], 0  ;;  %v44_v7 = vld [vmem:[%s3047_s0 + $0x8] sm:$0xff]  ;;  %75 = vadd.xlane.f32.xlu2 %v74_v6  ;;  %v71_v9 = vsel %vm61_vm0, %v46_v5, 0.0  ;;  %v49_v12 = vld [vmem:[%s3047_s0 + $0x30] sm:$0xff]  ;;  %v1942_v14 = vmov 32.0  }
   0x5   :  { %v48_v8 = vld [vmem:[%s3047_s0 + $0x28] sm:$0xff]  ;;  %v65_v10 = vsel %vm61_vm0, %v44_v7, 0.0  ;;  %v80_v13 = vsel %vm61_vm0, %v49_v12, 0.0  ;;  %1802 = vrcp.f32 %v1942_v14  ;;  %v2056_v33 = vld [vmem:[%s3047_s0 + $0x38] sm:$0xff]  ;;  %v2076_v44 = vld [vmem:[%s3047_s0 + $0x50] sm:$0xff] }
   0x6   :  { %v77_v11 = vsel %vm61_vm0, %v48_v8, 0.0  ;;  %v83_v38 = vsel %vm61_vm0, %v2056_v33, 0.0  ;;  %v2081_v45 = vld [vmem:[%s3047_s0 + $0x40] sm:$0xff]  ;;  %v92_v48 = vsel %vm61_vm0, %v2076_v44, 0.0  ;;  %v2099_v55 = vld [vmem:[%s3047_s0 + $0x58] sm:$0xff]  ;;  %v2104_v56 = vld [vmem:[%s3047_s0 + $0x48] sm:$0xff] }
   0x7   :  { %v86_v49 = vsel %vm61_vm0, %v2081_v45, 0.0  ;;  %v95_v59 = vsel %vm61_vm0, %v2099_v55, 0.0  ;;  %v89_v61 = vsel %vm61_vm0, %v2104_v56, 0.0  ;;  %v2121_v63 = vld [vmem:[%s3047_s0 + $0x60] sm:$0xff] }
   0x8   :  { %v98_v2 = vsel %vm61_vm0, %v2121_v63, 0.0  ;;  %v1779_v14 = vld [vmem:[%s3050_s3] sm:$0xff] }
   0xb   :  { %72 = vadd.xlane.f32.xlu1 %v71_v9  ;;  %66 = vadd.xlane.f32.xlu0 %v65_v10  ;;  %v1803_v15 = vpop.eup %1802  ;;  %v1780_v10 = vld [vmem:[%s3050_s3 + $0x8] sm:$0xff] }
   0xc   :  { %78 = vadd.xlane.f32.xlu2 %v77_v11  ;;  %v111_v16 = vmul.f32 32.0, %v1803_v15  ;;  %vm115_vm1 = vweird.f32 %v1803_v15  ;;  %517 = vmatpush.bf16.msra.mxu0 %v1780_v10 }
   0xd   :  { %1785 = vmatpush.bf16.msra.mxu3 %v1780_v10 }
   0xe   :  { %v112_v17 = vsub.f32 1.0, %v111_v16 }
  0x10   :  { %v113_v18 = vmul.f32 %v1803_v15, %v112_v17  ;;  %518 = vmatpush.bf16.msra.mxu0 %v1779_v14 }
  0x11   :  { %1786 = vmatpush.bf16.msra.mxu3 %v1779_v14 }
  0x12   :  { %v114_v19 = vadd.f32 %v1803_v15, %v113_v18 }
  0x14   :  { %81 = vadd.xlane.f32.xlu2 %v80_v13  ;;  %v2042_v20 = vsel %vm115_vm1, %v1803_v15, %v114_v19 }
  0x76   :  { %v70_v21 = vpop.xlane.xlu1 %69  ;;  %v64_v22 = vpop.xlane.xlu0 %63 }
  0x77   :  { %v117_v23 = vmul.f32 %v2042_v20, %v64_v22  ;;  %v76_v24 = vpop.xlane.xlu2 %75  ;;  %v119_v32 = vmul.f32 %v2042_v20, %v70_v21 }
  0x78   :  { %v121_v54 = vmul.f32 %v2042_v20, %v76_v24 }
  0x79   :  { %v2045_v25 = vsub.f32 %v43_v1, %v117_v23  ;;  %v2068_v40 = vsub.f32 %v45_v0, %v119_v32 }
  0x7a   :  { %v2112_v60 = vsub.f32 %v2022_v4, %v121_v54  ;;  %v2132_v4 = vld [vmem:[%s3047_s0 + $0x78] sm:$0xff] }
  0x7b   :  { %v149_v26 = vmul.f32 %v2045_v25, %v2045_v25  ;;  %v151_v46 = vmul.f32 %v2068_v40, %v2068_v40  ;;  %v107_v6 = vsel %vm61_vm0, %v2132_v4, 0.0 }
  0x7c   :  { %v153_v0 = vmul.f32 %v2112_v60, %v2112_v60 }
  0x7d   :  { %v165_v27 = vsel %vm61_vm0, %v149_v26, 0.0  ;;  %v171_v50 = vsel %vm61_vm0, %v151_v46, 0.0 }
  0x7e   :  { %v73_v28 = vpop.xlane.xlu1 %72  ;;  %166 = vadd.xlane.f32.xlu0 %v165_v27  ;;  %v67_v29 = vpop.xlane.xlu0 %66  ;;  %v177_v3 = vsel %vm61_vm0, %v153_v0, 0.0 }
  0x7f   :  { %v120_v30 = vmul.f32 %v2042_v20, %v73_v28  ;;  %v118_v31 = vmul.f32 %v2042_v20, %v67_v29  ;;  %v79_v36 = vpop.xlane.xlu2 %78 }
  0x80   :  { %v122_v43 = vmul.f32 %v2042_v20, %v79_v36 }
  0x81   :  { %v2058_v34 = vsub.f32 %v46_v5, %v120_v30  ;;  %v2060_v35 = vsub.f32 %v44_v7, %v118_v31  ;;  %v2137_v5 = vld [vmem:[%s3047_s0 + $0x68] sm:$0xff] }
  0x82   :  { %v2085_v47 = vsub.f32 %v48_v8, %v122_v43  ;;  %v101_v7 = vsel %vm61_vm0, %v2137_v5, 0.0  ;;  %v2146_v8 = vld [vmem:[%s3047_s0 + $0x70] sm:$0xff] }
  0x83   :  { %v152_v37 = vmul.f32 %v2058_v34, %v2058_v34  ;;  %v150_v39 = vmul.f32 %v2060_v35, %v2060_v35  ;;  %v104_v9 = vsel %vm61_vm0, %v2146_v8, 0.0 }
  0x84   :  { %v154_v53 = vmul.f32 %v2085_v47, %v2085_v47 }
  0x85   :  { %v174_v41 = vsel %vm61_vm0, %v152_v37, 0.0  ;;  %v168_v42 = vsel %vm61_vm0, %v150_v39, 0.0 }
  0x86   :  { %175 = vadd.xlane.f32.xlu2 %v174_v41  ;;  %84 = vadd.xlane.f32.xlu0 %v83_v38  ;;  %v180_v58 = vsel %vm61_vm0, %v154_v53, 0.0 }
  0x87   :  { %169 = vadd.xlane.f32.xlu1 %v168_v42  ;;  %v82_v51 = vpop.xlane.xlu2 %81 }
  0x88   :  { %v123_v52 = vmul.f32 %v2042_v20, %v82_v51 }
  0x8a   :  { %v2106_v57 = vsub.f32 %v49_v12, %v123_v52 }
  0x8c   :  { %v155_v62 = vmul.f32 %v2106_v57, %v2106_v57 }
  0x8e   :  { %93 = vadd.xlane.f32.xlu2 %v92_v48  ;;  %87 = vadd.xlane.f32.xlu0 %v86_v49  ;;  %v183_v1 = vsel %vm61_vm0, %v155_v62, 0.0 }
  0x8f   :  { %172 = vadd.xlane.f32.xlu1 %v171_v50 }
  0x96   :  { %181 = vadd.xlane.f32.xlu2 %v180_v58  ;;  %96 = vadd.xlane.f32.xlu0 %v95_v59 }
  0x97   :  { %90 = vadd.xlane.f32.xlu1 %v89_v61 }
  0x9e   :  { %184 = vadd.xlane.f32.xlu2 %v183_v1  ;;  %99 = vadd.xlane.f32.xlu0 %v98_v2 }
  0x9f   :  { %178 = vadd.xlane.f32.xlu1 %v177_v3 }
  0xa6   :  { %108 = vadd.xlane.f32.xlu2 %v107_v6 }
  0xa7   :  { %102 = vadd.xlane.f32.xlu1 %v101_v7 }
  0xaf   :  { %105 = vadd.xlane.f32.xlu1 %v104_v9 }
  0xf1   :  { %v167_v11 = vpop.xlane.xlu0 %166 }
  0xf2   :  { %v213_v12 = vmul.f32 %v167_v11, %v2042_v20 }
  0xf4   :  { %v229_v13 = vadd.f32 1e-05, %v213_v12 }
  0xf6   :  { %1804 = vrsqrt.f32 %v229_v13  ;;  %vm251_vm3 = vweird.f32 %v229_v13 }
  0xf9   :  { %v176_v15 = vpop.xlane.xlu2 %175  ;;  %v85_v16 = vpop.xlane.xlu0 %84 }
  0xfa   :  { %v216_v17 = vmul.f32 %v176_v15, %v2042_v20  ;;  %v170_v18 = vpop.xlane.xlu1 %169  ;;  %v124_v19 = vmul.f32 %v2042_v20, %v85_v16  ;;  %v2213_v16 = vld [vmem:[%s3048_s1] ss:$0 sm:$0xff] }
  0xfb   :  { %v214_v21 = vmul.f32 %v170_v18, %v2042_v20 }
  0xfc   :  { %v1805_v22 = vpop.eup %1804  ;;  %v2160_v23 = vadd.f32 1e-05, %v216_v17  ;;  %v2163_v24 = vsub.f32 %v2056_v33, %v124_v19 }
  0xfd   :  { %v246_v26 = vmul.f32 %v1805_v22, %v229_v13  ;;  %v230_v27 = vadd.f32 1e-05, %v214_v21  ;;  %vm252_vm2 = vweird.f32 %v1805_v22 }
  0xfe   :  { %1806 = vrsqrt.f32 %v2160_v23  ;;  %v156_v28 = vmul.f32 %v2163_v24, %v2163_v24  ;;  %vm2189_vm4 = vmor %vm251_vm3, %vm252_vm2  ;;  %vm281_vm8 = vweird.f32 %v2160_v23 }
  0xff   :  { %v247_v29 = vmul.f32 %v1805_v22, %v246_v26  ;;  %1808 = vrsqrt.f32 %v230_v27  ;;  %vm261_vm6 = vweird.f32 %v230_v27 }
 0x100   :  { %v186_v30 = vsel %vm61_vm0, %v156_v28, 0.0 }
 0x101   :  { %v248_v31 = vmul.f32 0.5, %v247_v29  ;;  %v94_v32 = vpop.xlane.xlu2 %93  ;;  %187 = vadd.xlane.f32.xlu0 %v186_v30  ;;  %v88_v36 = vpop.xlane.xlu0 %87 }
 0x102   :  { %v127_v37 = vmul.f32 %v2042_v20, %v94_v32  ;;  %v173_v38 = vpop.xlane.xlu1 %172  ;;  %v125_v33 = vmul.f32 %v2042_v20, %v88_v36 }
 0x103   :  { %v249_v39 = vsub.f32 1.5, %v248_v31  ;;  %v215_v41 = vmul.f32 %v173_v38, %v2042_v20  ;;  %v2230_v31 = vld [vmem:[%s3049_s2] ss:$0 sm:$0xff] }
 0x104   :  { %v2172_v42 = vpop.eup %1806  ;;  %v2175_v43 = vsub.f32 %v2076_v44, %v127_v37  ;;  %v2178_v46 = vsub.f32 %v2081_v45, %v125_v33 }
 0x105   :  { %v1809_v48 = vpop.eup %1808  ;;  %v250_v49 = vmul.f32 %v1805_v22, %v249_v39  ;;  %v2180_v50 = vadd.f32 1e-05, %v215_v41  ;;  %v276_v51 = vmul.f32 %v2172_v42, %v2160_v23  ;;  %vm282_vm9 = vweird.f32 %v2172_v42 }
 0x106   :  { %v256_v52 = vmul.f32 %v1809_v48, %v230_v27  ;;  %v159_v53 = vmul.f32 %v2175_v43, %v2175_v43  ;;  %v157_v54 = vmul.f32 %v2178_v46, %v2178_v46  ;;  %vm262_vm5 = vweird.f32 %v1809_v48  ;;  %vm2246_vm12 = vmor %vm281_vm8, %vm282_vm9 }
 0x107   :  { %1810 = vrsqrt.f32 %v2180_v50  ;;  %v254_v61 = vsel %vm2189_vm4, %v1805_v22, %v250_v49  ;;  %v277_v1 = vmul.f32 %v2172_v42, %v276_v51  ;;  %vm263_vm7 = vmor %vm261_vm6, %vm262_vm5  ;;  %vm271_vm11 = vweird.f32 %v2180_v50 }
 0x108   :  { %v257_v45 = vmul.f32 %v1809_v48, %v256_v52  ;;  %v195_v58 = vsel %vm61_vm0, %v159_v53, 0.0  ;;  %v189_v59 = vsel %vm61_vm0, %v157_v54, 0.0  ;;  %v405_v14 = vmul.f32 %v254_v61, %v2045_v25 }
 0x109   :  { %196 = vadd.xlane.f32.xlu2 %v195_v58  ;;  %v182_v62 = vpop.xlane.xlu2 %181  ;;  %190 = vadd.xlane.f32.xlu0 %v189_v59  ;;  %v97_v0 = vpop.xlane.xlu0 %96  ;;  %v278_v17 = vmul.f32 0.5, %v277_v1 }
 0x10a   :  { %v258_v2 = vmul.f32 0.5, %v257_v45  ;;  %v218_v3 = vmul.f32 %v182_v62, %v2042_v20  ;;  %v91_v6 = vpop.xlane.xlu1 %90  ;;  %v128_v7 = vmul.f32 %v2042_v20, %v97_v0  ;;  %v424_v30 = vmul.f32 %v2213_v16, %v405_v14 }
 0x10b   :  { %v126_v9 = vmul.f32 %v2042_v20, %v91_v6  ;;  %v279_v32 = vsub.f32 1.5, %v278_v17 }
 0x10c   :  { %v259_v10 = vsub.f32 1.5, %v258_v2  ;;  %v2201_v11 = vadd.f32 1e-05, %v218_v3  ;;  %v2204_v12 = vsub.f32 %v2099_v55, %v128_v7  ;;  %v443_v51 = vadd.f32 %v2230_v31, %v424_v30 }
 0x10d   :  { %v1811_v13 = vpop.eup %1810  ;;  %v2208_v15 = vsub.f32 %v2104_v56, %v126_v9  ;;  %v280_v52 = vmul.f32 %v2172_v42, %v279_v32 }
 0x10e   :  { %v260_v18 = vmul.f32 %v1809_v48, %v259_v10  ;;  %v266_v19 = vmul.f32 %v1811_v13, %v2180_v50  ;;  %1812 = vrsqrt.f32 %v2201_v11  ;;  %v160_v25 = vmul.f32 %v2204_v12, %v2204_v12 }
 0x10f   :  { %v158_v55 = vmul.f32 %v2208_v15, %v2208_v15  ;;  %vm272_vm10 = vweird.f32 %v1811_v13  ;;  %v284_v61 = vsel %vm2246_vm12, %v2172_v42, %v280_v52  ;;  %vm301_vm14 = vweird.f32 %v2201_v11 }
 0x110   :  { %v264_v56 = vsel %vm263_vm7, %v1809_v48, %v260_v18  ;;  %v267_v21 = vmul.f32 %v1811_v13, %v266_v19  ;;  %v198_v28 = vsel %vm61_vm0, %v160_v25, 0.0  ;;  %vm273_vm13 = vmor %vm271_vm11, %vm272_vm10  ;;  %v408_v9 = vmul.f32 %v284_v61, %v2058_v34 }
 0x111   :  { %v406_v22 = vmul.f32 %v264_v56, %v2060_v35  ;;  %v2222_v26 = vpop.xlane.xlu2 %184  ;;  %v192_v27 = vsel %vm61_vm0, %v158_v55, 0.0  ;;  %v100_v29 = vpop.xlane.xlu0 %99  ;;  %199 = vadd.xlane.f32.xlu0 %v198_v28 }
 0x112   :  { %v268_v36 = vmul.f32 0.5, %v267_v21  ;;  %193 = vadd.xlane.f32.xlu1 %v192_v27  ;;  %v179_v37 = vpop.xlane.xlu1 %178  ;;  %v129_v35 = vmul.f32 %v2042_v20, %v100_v29  ;;  %v427_v34 = vmul.f32 %v2213_v16, %v408_v9  ;;  %v219_v52 = vmul.f32 %v2222_v26, %v2042_v20 }
 0x113   :  { %v217_v38 = vmul.f32 %v179_v37, %v2042_v20  ;;  %v425_v33 = vmul.f32 %v2213_v16, %v406_v22 }
 0x114   :  { %v2237_v39 = vpop.eup %1812  ;;  %v269_v41 = vsub.f32 1.5, %v268_v36  ;;  %v2240_v48 = vsub.f32 %v2121_v63, %v129_v35  ;;  %v446_v28 = vadd.f32 %v2230_v31, %v427_v34 }
 0x115   :  { %v233_v49 = vadd.f32 1e-05, %v217_v38  ;;  %v444_v23 = vadd.f32 %v2230_v31, %v425_v33  ;;  %v296_v44 = vmul.f32 %v2237_v39, %v2201_v11  ;;  %vm302_vm15 = vweird.f32 %v2237_v39 }
 0x116   :  { %v270_v54 = vmul.f32 %v1811_v13, %v269_v41  ;;  %v161_v63 = vmul.f32 %v2240_v48, %v2240_v48  ;;  %vm303_vm3 = vmor %vm301_vm14, %vm302_vm15 }
 0x117   :  { %1814 = vrsqrt.f32 %v233_v49  ;;  %v459_v50 = vpack.c.bf16 %v444_v23, %v443_v51  ;;  %v297_v62 = vmul.f32 %v2237_v39, %v296_v44  ;;  %vm291_vm1 = vweird.f32 %v233_v49 }
 0x118   :  { %v274_v45 = vsel %vm273_vm13, %v1811_v13, %v270_v54  ;;  %v201_v58 = vsel %vm61_vm0, %v161_v63, 0.0 }
 0x119   :  { %1747 = vmatmul.msk.bf16.vlgmr.msra.gmra.mxu0 %vm61_vm0, %v459_v50  ;;  %v109_v59 = vpop.xlane.xlu2 %108  ;;  %v407_v2 = vmul.f32 %v274_v45, %v2068_v40  ;;  %v298_v42 = vmul.f32 0.5, %v297_v62 }
 0x11a   :  { %v132_v0 = vmul.f32 %v2042_v20, %v109_v59  ;;  %v103_v1 = vpop.xlane.xlu1 %102  ;;  %202 = vadd.xlane.f32.xlu1 %v201_v58 }
 0x11b   :  { %v130_v3 = vmul.f32 %v2042_v20, %v103_v1  ;;  %v426_v40 = vmul.f32 %v2213_v16, %v407_v2  ;;  %v299_v55 = vsub.f32 1.5, %v298_v42 }
 0x11c   :  { %v2264_v6 = vsub.f32 %v2132_v4, %v132_v0 }
 0x11d   :  { %v1815_v7 = vpop.eup %1814  ;;  %v2268_v10 = vsub.f32 %v2137_v5, %v130_v3  ;;  %v445_v21 = vadd.f32 %v2230_v31, %v426_v40  ;;  %v300_v29 = vmul.f32 %v2237_v39, %v299_v55 }
 0x11e   :  { %v286_v13 = vmul.f32 %v1815_v7, %v233_v49  ;;  %v164_v14 = vmul.f32 %v2264_v6, %v2264_v6  ;;  %vm292_vm2 = vweird.f32 %v1815_v7 }
 0x11f   :  { %v162_v17 = vmul.f32 %v2268_v10, %v2268_v10  ;;  %vm293_vm4 = vmor %vm291_vm1, %vm292_vm2  ;;  %v460_v11 = vpack.c.bf16 %v446_v28, %v445_v21  ;;  %v304_v35 = vsel %vm303_vm3, %v2237_v39, %v300_v29  ;;  %v235_v39 = vadd.f32 1e-05, %v219_v52 }
 0x120   :  { %v287_v18 = vmul.f32 %v1815_v7, %v286_v13  ;;  %v210_v4 = vsel %vm61_vm0, %v164_v14, 0.0  ;;  %v410_v38 = vmul.f32 %v304_v35, %v2085_v47 }
 0x121   :  { %v204_v19 = vsel %vm61_vm0, %v162_v17, 0.0  ;;  %1816 = vrsqrt.f32 %v235_v39  ;;  %vm311_vm5 = vweird.f32 %v235_v39 }
 0x122   :  { %v288_v5 = vmul.f32 0.5, %v287_v18  ;;  %205 = vadd.xlane.f32.xlu2 %v204_v19  ;;  %v106_v25 = vpop.xlane.xlu1 %105  ;;  %211 = vadd.xlane.f32.xlu1 %v210_v4  ;;  %v429_v41 = vmul.f32 %v2213_v16, %v410_v38 }
 0x123   :  { %v131_v56 = vmul.f32 %v2042_v20, %v106_v25 }
 0x124   :  { %v289_v22 = vsub.f32 1.5, %v288_v5  ;;  %v448_v51 = vadd.f32 %v2230_v31, %v429_v41 }
 0x125   :  { %v2283_v27 = vsub.f32 %v2146_v8, %v131_v56 }
 0x126   :  { %v290_v30 = vmul.f32 %v1815_v7, %v289_v22 }
 0x127   :  { %v163_v32 = vmul.f32 %v2283_v27, %v2283_v27  ;;  %v1817_v53 = vpop.eup %1816 }
 0x128   :  { %v294_v36 = vsel %vm293_vm4, %v1815_v7, %v290_v30  ;;  %vm312_vm6 = vweird.f32 %v1817_v53 }
 0x129   :  { %1748 = vmatmul.msk.bf16.gmra.mxu0 %vm61_vm0, %v460_v11  ;;  %v207_v37 = vsel %vm61_vm0, %v163_v32, 0.0  ;;  %v409_v8 = vmul.f32 %v294_v36, %v2112_v60  ;;  %v306_v60 = vmul.f32 %v1817_v53, %v235_v39  ;;  %vm313_vm7 = vmor %vm311_vm5, %vm312_vm6 }
 0x12a   :  { %208 = vadd.xlane.f32.xlu0 %v207_v37 }
 0x12b   :  { %v428_v33 = vmul.f32 %v2213_v16, %v409_v8  ;;  %v307_v54 = vmul.f32 %v1817_v53, %v306_v60 }
 0x12d   :  { %v447_v49 = vadd.f32 %v2230_v31, %v428_v33  ;;  %v308_v50 = vmul.f32 0.5, %v307_v54 }
 0x12f   :  { %v461_v23 = vpack.c.bf16 %v448_v51, %v447_v49  ;;  %v309_v45 = vsub.f32 1.5, %v308_v50 }
 0x131   :  { %v310_v2 = vmul.f32 %v1817_v53, %v309_v45 }
 0x133   :  { %v314_v9 = vsel %vm313_vm7, %v1817_v53, %v310_v2 }
 0x134   :  { %v411_v19 = vmul.f32 %v314_v9, %v2106_v57 }
 0x136   :  { %v430_v30 = vmul.f32 %v2213_v16, %v411_v19 }
 0x138   :  { %v449_v33 = vadd.f32 %v2230_v31, %v430_v30 }
 0x139   :  { %1749 = vmatmul.msk.bf16.gmra.mxu0 %vm61_vm0, %v461_v23 }
 0x174   :  { %v188_v47 = vpop.xlane.xlu0 %187 }
 0x175   :  { %v220_v44 = vmul.f32 %v188_v47, %v2042_v20  ;;  %v2341_v47 = vld [vmem:[%s3051_s4] ss:$0 sm:$0xff] }
 0x177   :  { %v236_v63 = vadd.f32 1e-05, %v220_v44 }
 0x179   :  { %1818 = vrsqrt.f32 %v236_v63  ;;  %vm321_vm9 = vweird.f32 %v236_v63 }
 0x17c   :  { %v197_v58 = vpop.xlane.xlu2 %196  ;;  %v191_v59 = vpop.xlane.xlu0 %190 }
 0x17d   :  { %v223_v61 = vmul.f32 %v197_v58, %v2042_v20  ;;  %v221_v62 = vmul.f32 %v191_v59, %v2042_v20 }
 0x17f   :  { %v1819_v26 = vpop.eup %1818  ;;  %v239_v0 = vadd.f32 1e-05, %v223_v61  ;;  %v2304_v1 = vadd.f32 1e-05, %v221_v62 }
 0x180   :  { %v316_v3 = vmul.f32 %v1819_v26, %v236_v63  ;;  %vm322_vm8 = vweird.f32 %v1819_v26 }
 0x181   :  { %1820 = vrsqrt.f32 %v239_v0  ;;  %vm323_vm10 = vmor %vm321_vm9, %vm322_vm8  ;;  %vm351_vm11 = vweird.f32 %v239_v0  ;;  %vm331_vm13 = vweird.f32 %v2304_v1 }
 0x182   :  { %v317_v7 = vmul.f32 %v1819_v26, %v316_v3  ;;  %1822 = vrsqrt.f32 %v2304_v1 }
 0x184   :  { %v318_v42 = vmul.f32 0.5, %v317_v7  ;;  %v200_v14 = vpop.xlane.xlu0 %199 }
 0x185   :  { %v194_v13 = vpop.xlane.xlu1 %193  ;;  %v224_v18 = vmul.f32 %v200_v14, %v2042_v20 }
 0x186   :  { %v319_v17 = vsub.f32 1.5, %v318_v42  ;;  %v222_v40 = vmul.f32 %v194_v13, %v2042_v20 }
 0x187   :  { %v2309_v4 = vpop.eup %1820  ;;  %v2317_v21 = vadd.f32 1e-05, %v224_v18 }
 0x188   :  { %v2312_v34 = vpop.eup %1822  ;;  %v320_v55 = vmul.f32 %v1819_v26, %v319_v17  ;;  %v346_v5 = vmul.f32 %v2309_v4, %v239_v0  ;;  %v238_v25 = vadd.f32 1e-05, %v222_v40  ;;  %vm352_vm12 = vweird.f32 %v2309_v4 }
 0x189   :  { %v326_v56 = vmul.f32 %v2312_v34, %v2304_v1  ;;  %vm332_vm14 = vweird.f32 %v2312_v34  ;;  %vm2343_vm15 = vmor %vm351_vm11, %vm352_vm12  ;;  %vm361_vm1 = vweird.f32 %v2317_v21 }
 0x18a   :  { %v324_v22 = vsel %vm323_vm10, %v1819_v26, %v320_v55  ;;  %v347_v28 = vmul.f32 %v2309_v4, %v346_v5  ;;  %1824 = vrsqrt.f32 %v238_v25  ;;  %vm2350_vm2 = vmor %vm331_vm13, %vm332_vm14  ;;  %vm341_vm5 = vweird.f32 %v238_v25 }
 0x18b   :  { %v412_v29 = vmul.f32 %v324_v22, %v2163_v24  ;;  %v327_v57 = vmul.f32 %v2312_v34, %v326_v56  ;;  %1826 = vrsqrt.f32 %v2317_v21 }
 0x18c   :  { %v348_v11 = vmul.f32 0.5, %v347_v28 }
 0x18d   :  { %v328_v32 = vmul.f32 0.5, %v327_v57  ;;  %v203_v36 = vpop.xlane.xlu1 %202  ;;  %v431_v37 = vmul.f32 %v2213_v16, %v412_v29 }
 0x18e   :  { %v225_v35 = vmul.f32 %v203_v36, %v2042_v20  ;;  %v349_v8 = vsub.f32 1.5, %v348_v11 }
 0x18f   :  { %v329_v38 = vsub.f32 1.5, %v328_v32  ;;  %v450_v41 = vadd.f32 %v2230_v31, %v431_v37 }
 0x190   :  { %v1825_v24 = vpop.eup %1824  ;;  %v2328_v49 = vadd.f32 1e-05, %v225_v35  ;;  %v350_v53 = vmul.f32 %v2309_v4, %v349_v8 }
 0x191   :  { %v1827_v51 = vpop.eup %1826  ;;  %v336_v23 = vmul.f32 %v1825_v24, %v238_v25  ;;  %v462_v52 = vpack.c.bf16 %v450_v41, %v449_v33  ;;  %v330_v60 = vmul.f32 %v2312_v34, %v329_v38  ;;  %vm342_vm3 = vweird.f32 %v1825_v24 }
 0x192   :  { %v356_v39 = vmul.f32 %v1827_v51, %v2317_v21  ;;  %1828 = vrsqrt.f32 %v2328_v49  ;;  %v354_v2 = vsel %vm2343_vm15, %v2309_v4, %v350_v53  ;;  %vm362_vm4 = vweird.f32 %v1827_v51  ;;  %vm343_vm6 = vmor %vm341_vm5, %vm342_vm3 }
 0x193   :  { %v337_v54 = vmul.f32 %v1825_v24, %v336_v23  ;;  %1750 = vmatmul.msk.bf16.gmra.mxu0 %vm61_vm0, %v462_v52  ;;  %v334_v3 = vsel %vm2350_vm2, %v2312_v34, %v330_v60  ;;  %v415_v34 = vmul.f32 %v354_v2, %v2175_v43  ;;  %vm363_vm7 = vmor %vm361_vm1, %vm362_vm4  ;;  %vm371_vm8 = vweird.f32 %v2328_v49 }
 0x194   :  { %v357_v63 = vmul.f32 %v1827_v51, %v356_v39  ;;  %v413_v4 = vmul.f32 %v334_v3, %v2178_v46  ;;  %vm1032_vm5 = vcmask 523264  }
 0x195   :  { %v338_v50 = vmul.f32 0.5, %v337_v54  ;;  %v206_v45 = vpop.xlane.xlu2 %205  ;;  %v212_v58 = vpop.xlane.xlu1 %211 }
 0x196   :  { %v358_v61 = vmul.f32 0.5, %v357_v63  ;;  %v226_v62 = vmul.f32 %v206_v45, %v2042_v20  ;;  %v228_v26 = vmul.f32 %v212_v58, %v2042_v20  ;;  %v520_v0 = vpop.f32.mrf.mxu0  ;;  %v432_v30 = vmul.f32 %v2213_v16, %v413_v4 }
 0x197   :  { %v339_v1 = vsub.f32 1.5, %v338_v50  ;;  %v521_v7 = vadd.f32 %v2341_v47, %v520_v0 }
 0x198   :  { %v2363_v9 = vpop.eup %1828  ;;  %v359_v42 = vsub.f32 1.5, %v358_v61  ;;  %v2365_v13 = vadd.f32 1e-05, %v226_v62  ;;  %v2367_v14 = vadd.f32 1e-05, %v228_v26  ;;  %v451_v23 = vadd.f32 %v2230_v31, %v432_v30 }
 0x199   :  { %v340_v17 = vmul.f32 %v1825_v24, %v339_v1  ;;  %v366_v40 = vmul.f32 %v2363_v9, %v2328_v49  ;;  %v560_v18 = vpack.c.bf16 %v521_v7, %v521_v7  ;;  %vm372_vm9 = vweird.f32 %v2363_v9 }
 0x19a   :  { %v360_v19 = vmul.f32 %v1827_v51, %v359_v42  ;;  %1830 = vrsqrt.f32 %v2365_v13  ;;  %vm2404_vm10 = vmor %vm371_vm8, %vm372_vm9  ;;  %vm381_vm11 = vweird.f32 %v2365_v13  ;;  %vm401_vm1 = vweird.f32 %v2367_v14 }
 0x19b   :  { %v344_v55 = vsel %vm343_vm6, %v1825_v24, %v340_v17  ;;  %v367_v5 = vmul.f32 %v2363_v9, %v366_v40  ;;  %v2378_v25 = vunpack.c.l.bf16 %v560_v18  ;;  %1832 = vrsqrt.f32 %v2367_v14 }
 0x19c   :  { %v414_v56 = vmul.f32 %v344_v55, %v2208_v15  ;;  %v364_v22 = vsel %vm363_vm7, %v1827_v51, %v360_v19 }
 0x19d   :  { %v416_v46 = vmul.f32 %v364_v22, %v2204_v12  ;;  %v368_v28 = vmul.f32 0.5, %v367_v5  ;;  %v592_v29 = vmul.f32 %v2378_v25, %v2378_v25  ;;  %v209_v43 = vpop.xlane.xlu0 %208  ;;  %v434_v12 = vmul.f32 %v2213_v16, %v415_v34 }
 0x19e   :  { %v227_v21 = vmul.f32 %v209_v43, %v2042_v20  ;;  %v522_v57 = vpop.f32.mrf.mxu0  ;;  %v433_v11 = vmul.f32 %v2213_v16, %v414_v56 }
 0x19f   :  { %v369_v15 = vsub.f32 1.5, %v368_v28  ;;  %v608_v32 = vpack.c.bf16 %v592_v29, %v592_v29  ;;  %v523_v36 = vadd.f32 %v2341_v47, %v522_v57  ;;  %v435_v38 = vmul.f32 %v2213_v16, %v416_v46 }
 0x1a0   :  { %v1831_v37 = vpop.eup %1830  ;;  %v2392_v35 = vadd.f32 1e-05, %v227_v21  ;;  %v452_v8 = vadd.f32 %v2230_v31, %v433_v11  ;;  %v453_v44 = vadd.f32 %v2230_v31, %v434_v12 }
 0x1a1   :  { %v376_v33 = vmul.f32 %v1831_v37, %v2365_v13  ;;  %v624_v41 = vunpack.c.l.bf16 %v608_v32  ;;  %v2397_v24 = vpop.eup %1832  ;;  %v370_v51 = vmul.f32 %v2363_v9, %v369_v15  ;;  %v561_v60 = vpack.c.bf16 %v523_v36, %v523_v36 }
 0x1a2   :  { %1834 = vrsqrt.f32 %v2392_v35  ;;  %v463_v54 = vpack.c.bf16 %v452_v8, %v451_v23  ;;  %v454_v63 = vadd.f32 %v2230_v31, %v435_v38  ;;  %v396_v45 = vmul.f32 %v2397_v24, %v2367_v14  ;;  %v1784_v38 = vld [vmem:[%s3052_s5 + $0x18] sm:$0xff] }
 0x1a3   :  { %v377_v39 = vmul.f32 %v1831_v37, %v376_v33  ;;  %v640_v53 = vmul.f32 %v624_v41, %v2378_v25  ;;  %v2413_v59 = vunpack.c.l.bf16 %v561_v60  ;;  %v374_v49 = vsel %vm2404_vm10, %v2363_v9, %v370_v51  ;;  %1061 = vmatpush.bf16.msra.mxu1 %v1784_v38  ;;  %1787 = vmatpush.bf16.msra.mxu2 %v1784_v38 }
 0x1a4   :  { %vm382_vm12 = vweird.f32 %v1831_v37  ;;  %1751 = vmatmul.msk.bf16.gmra.mxu0 %vm61_vm0, %v463_v54  ;;  %v464_v61 = vpack.c.bf16 %v454_v63, %v453_v44  ;;  %v397_v9 = vmul.f32 %v2397_v24, %v396_v45  ;;  %v417_v40 = vmul.f32 %v374_v49, %v2240_v48 }
 0x1a5   :  { %v378_v50 = vmul.f32 0.5, %v377_v39  ;;  %v656_v58 = vpack.c.bf16 %v640_v53, %v640_v53  ;;  %v593_v2 = vmul.f32 %v2413_v59, %v2413_v59  ;;  %vm383_vm13 = vmor %vm381_vm11, %vm382_vm12  ;;  %vm391_vm14 = vweird.f32 %v2392_v35 }
 0x1a6   :  { %v525_v62 = vpop.f32.mrf.mxu0  ;;  %1752 = vmatmul.msk.bf16.vlgmr.msra.gmra.mxu3 %vm61_vm0, %v464_v61  ;;  %v398_v46 = vmul.f32 0.5, %v397_v9  ;;  %v436_v21 = vmul.f32 %v2213_v16, %v417_v40  ;;  %vm402_vm2 = vweird.f32 %v2397_v24  ;;  %v1782_v40 = vld [vmem:[%s3052_s5 + $0x8] sm:$0xff] }
 0x1a7   :  { %v379_v26 = vsub.f32 1.5, %v378_v50  ;;  %v672_v0 = vunpack.c.l.bf16 %v656_v58  ;;  %v526_v3 = vadd.f32 %v2341_v47, %v525_v62  ;;  %v609_v18 = vpack.c.bf16 %v593_v2, %v593_v2  ;;  %vm2471_vm4 = vmor %vm401_vm1, %vm402_vm2 }
 0x1a8   :  { %v2423_v1 = vpop.eup %1834  ;;  %v399_v12 = vsub.f32 1.5, %v398_v46  ;;  %v455_v23 = vadd.f32 %v2230_v31, %v436_v21 }
 0x1a9   :  { %v380_v7 = vmul.f32 %v1831_v37, %v379_v26  ;;  %v688_v42 = vmul.f32 0.044677734, %v672_v0  ;;  %v386_v17 = vmul.f32 %v2423_v1, %v2392_v35  ;;  %v562_v4 = vpack.c.bf16 %v526_v3, %v526_v3  ;;  %v1783_v35 = vld [vmem:[%s3052_s5 + $0x10] sm:$0xff] }
 0x1aa   :  { %v625_v56 = vunpack.c.l.bf16 %v609_v18  ;;  %vm392_vm15 = vweird.f32 %v2423_v1  ;;  %v400_v14 = vmul.f32 %v2397_v24, %v399_v12  ;;  %1062 = vmatpush.bf16.msra.mxu1 %v1783_v35  ;;  %1788 = vmatpush.bf16.msra.mxu2 %v1783_v35 }
 0x1ab   :  { %v384_v19 = vsel %vm383_vm13, %v1831_v37, %v380_v7  ;;  %v704_v34 = vpack.c.bf16 %v688_v42, %v688_v42  ;;  %v387_v55 = vmul.f32 %v2423_v1, %v386_v17  ;;  %v2435_v22 = vunpack.c.l.bf16 %v562_v4  ;;  %vm2458_vm3 = vmor %vm391_vm14, %vm392_vm15 }
 0x1ac   :  { %v418_v5 = vmul.f32 %v384_v19, %v2268_v10  ;;  %v641_v48 = vmul.f32 %v625_v56, %v2413_v59  ;;  %v404_v9 = vsel %vm2471_vm4, %v2397_v24, %v400_v14 }
 0x1ad   :  { %v720_v28 = vunpack.c.l.bf16 %v704_v34  ;;  %v388_v29 = vmul.f32 0.5, %v387_v55  ;;  %v594_v13 = vmul.f32 %v2435_v22, %v2435_v22  ;;  %v420_v24 = vmul.f32 %v404_v9, %v2264_v6 }
 0x1ae   :  { %v527_v43 = vpop.f32.mrf.mxu0  ;;  %v437_v57 = vmul.f32 %v2213_v16, %v418_v5  ;;  %v657_v15 = vpack.c.bf16 %v641_v48, %v641_v48  ;;  %1063 = vmatpush.bf16.msra.mxu1 %v1782_v40  ;;  %1789 = vmatpush.bf16.msra.mxu2 %v1782_v40 }
 0x1af   :  { %v736_v30 = vadd.f32 %v720_v28, %v2378_v25  ;;  %v389_v11 = vsub.f32 1.5, %v388_v29  ;;  %v528_v10 = vadd.f32 %v2341_v47, %v527_v43  ;;  %v610_v32 = vpack.c.bf16 %v594_v13, %v594_v13 }
 0x1b0   :  { %v456_v36 = vadd.f32 %v2230_v31, %v437_v57  ;;  %v673_v41 = vunpack.c.l.bf16 %v657_v15 }
 0x1b1   :  { %v752_v37 = vpack.c.bf16 %v736_v30, %v736_v30  ;;  %v563_v8 = vpack.c.bf16 %v528_v10, %v528_v10  ;;  %v390_v33 = vmul.f32 %v2423_v1, %v389_v11  ;;  %v626_v51 = vunpack.c.l.bf16 %v610_v32 }
 0x1b2   :  { %v689_v60 = vmul.f32 0.044677734, %v673_v41  ;;  %v465_v44 = vpack.c.bf16 %v456_v36, %v455_v23  ;;  %v439_v10 = vmul.f32 %v2213_v16, %v420_v24 }
 0x1b3   :  { %v768_v52 = vunpack.c.l.bf16 %v752_v37  ;;  %v2462_v53 = vunpack.c.l.bf16 %v563_v8  ;;  %v642_v54 = vmul.f32 %v626_v51, %v2435_v22  ;;  %v394_v58 = vsel %vm2458_vm3, %v2423_v1, %v390_v33 }
 0x1b4   :  { %v705_v49 = vpack.c.bf16 %v689_v60, %v689_v60  ;;  %v419_v18 = vmul.f32 %v394_v58, %v2283_v27  ;;  %v1781_v27 = vld [vmem:[%s3052_s5] sm:$0xff]  ;;  %v458_v60 = vadd.f32 %v2230_v31, %v439_v10 }
 0x1b5   :  { %v784_v63 = vmul.f32 0.796875, %v768_v52  ;;  %v595_v50 = vmul.f32 %v2462_v53, %v2462_v53  ;;  %v658_v61 = vpack.c.bf16 %v642_v54, %v642_v54  ;;  %1064 = vmatpush.bf16.msra.mxu1 %v1781_v27  ;;  %1790 = vmatpush.bf16.msra.mxu2 %v1781_v27 }
 0x1b6   :  { %v530_v62 = vpop.f32.mrf.mxu0  ;;  %v721_v3 = vunpack.c.l.bf16 %v705_v49  ;;  %1753 = vmatmul.msk.bf16.gmra.mxu3 %vm61_vm0, %v465_v44  ;;  %v438_v43 = vmul.f32 %v2213_v16, %v419_v18 }
 0x1b7   :  { %v800_v26 = vpack.c.bf16 %v784_v63, %v784_v63  ;;  %v611_v0 = vpack.c.bf16 %v595_v50, %v595_v50  ;;  %v531_v2 = vadd.f32 %v2341_v47, %v530_v62  ;;  %v674_v7 = vunpack.c.l.bf16 %v658_v61 }
 0x1b8   :  { %v737_v4 = vadd.f32 %v721_v3, %v2413_v59  ;;  %v457_v38 = vadd.f32 %v2230_v31, %v438_v43 }
 0x1b9   :  { %v816_v42 = vunpack.c.l.bf16 %v800_v26  ;;  %v627_v17 = vunpack.c.l.bf16 %v611_v0  ;;  %v564_v1 = vpack.c.bf16 %v531_v2, %v531_v2  ;;  %v690_v19 = vmul.f32 0.044677734, %v674_v7 }
 0x1ba   :  { %v753_v5 = vpack.c.bf16 %v737_v4, %v737_v4  ;;  %v466_v50 = vpack.c.bf16 %v458_v60, %v457_v38 }
 0x1bb   :  { %1836 = vtanh.f32 %v816_v42  ;;  %v643_v34 = vmul.f32 %v627_v17, %v2462_v53  ;;  %v2489_v55 = vunpack.c.l.bf16 %v564_v1  ;;  %v706_v56 = vpack.c.bf16 %v690_v19, %v690_v19 }
 0x1bc   :  { %v769_v29 = vunpack.c.l.bf16 %v753_v5 }
 0x1bd   :  { %v659_v46 = vpack.c.bf16 %v643_v34, %v643_v34  ;;  %v596_v28 = vmul.f32 %v2489_v55, %v2489_v55  ;;  %v722_v48 = vunpack.c.l.bf16 %v706_v56 }
 0x1be   :  { %v532_v13 = vpop.f32.mrf.mxu0  ;;  %v785_v6 = vmul.f32 0.796875, %v769_v29 }
 0x1bf   :  { %v675_v21 = vunpack.c.l.bf16 %v659_v46  ;;  %v612_v57 = vpack.c.bf16 %v596_v28, %v596_v28  ;;  %v533_v30 = vadd.f32 %v2341_v47, %v532_v13  ;;  %v738_v11 = vadd.f32 %v722_v48, %v2435_v22 }
 0x1c0   :  { %v801_v37 = vpack.c.bf16 %v785_v6, %v785_v6 }
 0x1c1   :  { %v1837_v15 = vpop.eup %1836  ;;  %v691_v32 = vmul.f32 0.044677734, %v675_v21  ;;  %v628_v36 = vunpack.c.l.bf16 %v612_v57  ;;  %v565_v12 = vpack.c.bf16 %v533_v30, %v533_v30  ;;  %v754_v8 = vpack.c.bf16 %v738_v11, %v738_v11 }
 0x1c2   :  { %v848_v33 = vpack.c.bf16 %v1837_v15, %v1837_v15  ;;  %v817_v52 = vunpack.c.l.bf16 %v801_v37 }
 0x1c3   :  { %v707_v41 = vpack.c.bf16 %v691_v32, %v691_v32  ;;  %v644_v51 = vmul.f32 %v628_v36, %v2489_v55  ;;  %v2503_v23 = vunpack.c.l.bf16 %v565_v12  ;;  %v770_v39 = vunpack.c.l.bf16 %v754_v8 }
 0x1c4   :  { %v864_v54 = vunpack.c.l.bf16 %v848_v33  ;;  %1838 = vtanh.f32 %v817_v52 }
 0x1c5   :  { %v723_v16 = vunpack.c.l.bf16 %v707_v41  ;;  %v660_v44 = vpack.c.bf16 %v644_v51, %v644_v51  ;;  %v597_v14 = vmul.f32 %v2503_v23, %v2503_v23  ;;  %v786_v63 = vmul.f32 0.796875, %v770_v39 }
 0x1c6   :  { %v880_v35 = vadd.f32 1.0, %v864_v54  ;;  %1754 = vmatmul.msk.bf16.gmra.mxu3 %vm61_vm0, %v466_v50 }
 0x1c7   :  { %v739_v45 = vadd.f32 %v723_v16, %v2462_v53  ;;  %v676_v58 = vunpack.c.l.bf16 %v660_v44  ;;  %v613_v49 = vpack.c.bf16 %v597_v14, %v597_v14  ;;  %v802_v61 = vpack.c.bf16 %v786_v63, %v786_v63 }
 0x1c8   :  { %v896_v62 = vpack.c.bf16 %v880_v35, %v880_v35 }
 0x1c9   :  { %v755_v26 = vpack.c.bf16 %v739_v45, %v739_v45  ;;  %v692_v31 = vmul.f32 0.044677734, %v676_v58  ;;  %v629_v0 = vunpack.c.l.bf16 %v613_v49  ;;  %v818_v2 = vunpack.c.l.bf16 %v802_v61 }
 0x1ca   :  { %v1839_v42 = vpop.eup %1838  ;;  %v912_v17 = vunpack.c.l.bf16 %v896_v62 }
 0x1cb   :  { %v771_v3 = vunpack.c.l.bf16 %v755_v26  ;;  %v708_v7 = vpack.c.bf16 %v692_v31, %v692_v31  ;;  %v645_v9 = vmul.f32 %v629_v0, %v2503_v23  ;;  %1840 = vtanh.f32 %v818_v2 }
 0x1cc   :  { %v849_v4 = vpack.c.bf16 %v1839_v42, %v1839_v42  ;;  %v928_v56 = vmul.f32 0.5, %v912_v17 }
 0x1cd   :  { %v787_v1 = vmul.f32 0.796875, %v771_v3  ;;  %v724_v40 = vunpack.c.l.bf16 %v708_v7  ;;  %v661_v18 = vpack.c.bf16 %v645_v9, %v645_v9 }
 0x1ce   :  { %v865_v5 = vunpack.c.l.bf16 %v849_v4  ;;  %v944_v10 = vpack.c.bf16 %v928_v56, %v928_v56 }
 0x1cf   :  { %v803_v19 = vpack.c.bf16 %v787_v1, %v787_v1  ;;  %v740_v34 = vadd.f32 %v724_v40, %v2489_v55  ;;  %v677_v24 = vunpack.c.l.bf16 %v661_v18 }
 0x1d0   :  { %v881_v29 = vadd.f32 1.0, %v865_v5  ;;  %v960_v51 = vunpack.c.l.bf16 %v944_v10 }
 0x1d1   :  { %v819_v46 = vunpack.c.l.bf16 %v803_v19  ;;  %v756_v28 = vpack.c.bf16 %v740_v34, %v740_v34  ;;  %v693_v27 = vmul.f32 0.044677734, %v677_v24  ;;  %v1841_v48 = vpop.eup %1840 }
 0x1d2   :  { %v897_v21 = vpack.c.bf16 %v881_v29, %v881_v29  ;;  %v850_v57 = vpack.c.bf16 %v1841_v48, %v1841_v48  ;;  %v976_v63 = vmul.f32 %v960_v51, %v2378_v25 }
 0x1d3   :  { %1842 = vtanh.f32 %v819_v46  ;;  %v772_v13 = vunpack.c.l.bf16 %v756_v28  ;;  %v709_v43 = vpack.c.bf16 %v693_v27, %v693_v27 }
 0x1d4   :  { %v913_v11 = vunpack.c.l.bf16 %v897_v21  ;;  %v866_v15 = vunpack.c.l.bf16 %v850_v57 }
 0x1d5   :  { %v788_v30 = vmul.f32 0.796875, %v772_v13  ;;  %v725_v6 = vunpack.c.l.bf16 %v709_v43 }
 0x1d6   :  { %v929_v12 = vmul.f32 0.5, %v913_v11  ;;  %v882_v37 = vadd.f32 1.0, %v866_v15 }
 0x1d7   :  { %v804_v32 = vpack.c.bf16 %v788_v30, %v788_v30  ;;  %v741_v36 = vadd.f32 %v725_v6, %v2503_v23 }
 0x1d8   :  { %v945_v41 = vpack.c.bf16 %v929_v12, %v929_v12  ;;  %v898_v39 = vpack.c.bf16 %v882_v37, %v882_v37 }
 0x1d9   :  { %v1843_v8 = vpop.eup %1842  ;;  %v820_v38 = vunpack.c.l.bf16 %v804_v32  ;;  %v757_v33 = vpack.c.bf16 %v741_v36, %v741_v36 }
 0x1da   :  { %v851_v52 = vpack.c.bf16 %v1843_v8, %v1843_v8  ;;  %v961_v54 = vunpack.c.l.bf16 %v945_v41  ;;  %v914_v44 = vunpack.c.l.bf16 %v898_v39 }
 0x1db   :  { %1844 = vtanh.f32 %v820_v38  ;;  %v773_v60 = vunpack.c.l.bf16 %v757_v33 }
 0x1dc   :  { %v867_v16 = vunpack.c.l.bf16 %v851_v52  ;;  %v977_v50 = vmul.f32 %v961_v54, %v2413_v59  ;;  %v930_v49 = vmul.f32 0.5, %v914_v44 }
 0x1dd   :  { %v789_v14 = vmul.f32 0.796875, %v773_v60 }
 0x1de   :  { %v883_v35 = vadd.f32 1.0, %v867_v16  ;;  %v992_v58 = vpack.c.bf16 %v977_v50, %v976_v63  ;;  %v946_v2 = vpack.c.bf16 %v930_v49, %v930_v49 }
 0x1df   :  { %v805_v45 = vpack.c.bf16 %v789_v14, %v789_v14 }
 0x1e0   :  { %v899_v61 = vpack.c.bf16 %v883_v35, %v883_v35  ;;  %1771 = vmatmul.msk.bf16.vlgmr.msra.gmra.mxu1 %vm1032_vm5, %v992_v58  ;;  %v962_v42 = vunpack.c.l.bf16 %v946_v2 }
 0x1e1   :  { %v1845_v62 = vpop.eup %1844  ;;  %v821_v26 = vunpack.c.l.bf16 %v805_v45 }
 0x1e2   :  { %v915_v31 = vunpack.c.l.bf16 %v899_v61  ;;  %v852_v0 = vpack.c.bf16 %v1845_v62, %v1845_v62  ;;  %v978_v4 = vmul.f32 %v962_v42, %v2435_v22 }
 0x1e3   :  { %1846 = vtanh.f32 %v821_v26 }
 0x1e4   :  { %v931_v3 = vmul.f32 0.5, %v915_v31  ;;  %v868_v7 = vunpack.c.l.bf16 %v852_v0 }
 0x1e6   :  { %v947_v9 = vpack.c.bf16 %v931_v3, %v931_v3  ;;  %v884_v25 = vadd.f32 1.0, %v868_v7 }
 0x1e8   :  { %v963_v59 = vunpack.c.l.bf16 %v947_v9  ;;  %v900_v17 = vpack.c.bf16 %v884_v25, %v884_v25 }
 0x1e9   :  { %v1847_v1 = vpop.eup %1846 }
 0x1ea   :  { %v979_v40 = vmul.f32 %v963_v59, %v2462_v53  ;;  %v853_v18 = vpack.c.bf16 %v1847_v1, %v1847_v1  ;;  %v916_v19 = vunpack.c.l.bf16 %v900_v17 }
 0x1ec   :  { %v869_v34 = vunpack.c.l.bf16 %v853_v18  ;;  %v993_v24 = vpack.c.bf16 %v979_v40, %v978_v4  ;;  %v932_v56 = vmul.f32 0.5, %v916_v19 }
 0x1ee   :  { %v885_v5 = vadd.f32 1.0, %v869_v34  ;;  %v948_v27 = vpack.c.bf16 %v932_v56, %v932_v56 }
 0x1f0   :  { %v901_v46 = vpack.c.bf16 %v885_v5, %v885_v5  ;;  %1772 = vmatmul.msk.bf16.gmra.mxu1 %vm1032_vm5, %v993_v24  ;;  %v964_v13 = vunpack.c.l.bf16 %v948_v27 }
 0x1f2   :  { %v917_v28 = vunpack.c.l.bf16 %v901_v46  ;;  %v980_v53 = vmul.f32 %v964_v13, %v2489_v55 }
 0x1f4   :  { %v933_v29 = vmul.f32 0.5, %v917_v28 }
 0x1f6   :  { %v949_v48 = vpack.c.bf16 %v933_v29, %v933_v29 }
 0x1f8   :  { %v965_v43 = vunpack.c.l.bf16 %v949_v48 }
 0x1fa   :  { %v981_v21 = vmul.f32 %v965_v43, %v2503_v23 }
 0x1fc   :  { %v994_v57 = vpack.c.bf16 %v981_v21, %v980_v53 }
 0x200   :  { %1773 = vmatmul.msk.bf16.gmra.mxu1 %vm1032_vm5, %v994_v57 }
 0x210   :  { %v535_v22 = vpop.f32.mrf.mxu0 }
 0x211   :  { %v536_v30 = vadd.f32 %v2341_v47, %v535_v22 }
 0x213   :  { %v566_v6 = vpack.c.bf16 %v536_v30, %v536_v30 }
 0x215   :  { %v2523_v11 = vunpack.c.l.bf16 %v566_v6 }
 0x217   :  { %v598_v10 = vmul.f32 %v2523_v11, %v2523_v11 }
 0x218   :  { %v537_v15 = vpop.f32.mrf.mxu0 }
 0x219   :  { %v614_v32 = vpack.c.bf16 %v598_v10, %v598_v10  ;;  %v538_v36 = vadd.f32 %v2341_v47, %v537_v15 }
 0x21b   :  { %v630_v12 = vunpack.c.l.bf16 %v614_v32  ;;  %v567_v23 = vpack.c.bf16 %v538_v36, %v538_v36 }
 0x21d   :  { %v646_v55 = vmul.f32 %v630_v12, %v2523_v11  ;;  %v2529_v37 = vunpack.c.l.bf16 %v567_v23 }
 0x21f   :  { %v662_v8 = vpack.c.bf16 %v646_v55, %v646_v55  ;;  %v599_v38 = vmul.f32 %v2529_v37, %v2529_v37 }
 0x221   :  { %v678_v33 = vunpack.c.l.bf16 %v662_v8  ;;  %v615_v41 = vpack.c.bf16 %v599_v38, %v599_v38  ;;  %v540_v39 = vpop.f32.mrf.mxu0 }
 0x222   :  { %v541_v60 = vadd.f32 %v2341_v47, %v540_v39 }
 0x223   :  { %v694_v51 = vmul.f32 0.044677734, %v678_v33  ;;  %v631_v52 = vunpack.c.l.bf16 %v615_v41 }
 0x224   :  { %v568_v44 = vpack.c.bf16 %v541_v60, %v541_v60 }
 0x225   :  { %v710_v54 = vpack.c.bf16 %v694_v51, %v694_v51  ;;  %v647_v16 = vmul.f32 %v631_v52, %v2529_v37 }
 0x226   :  { %v2535_v50 = vunpack.c.l.bf16 %v568_v44 }
 0x227   :  { %v726_v14 = vunpack.c.l.bf16 %v710_v54  ;;  %v663_v63 = vpack.c.bf16 %v647_v16, %v647_v16 }
 0x228   :  { %v600_v58 = vmul.f32 %v2535_v50, %v2535_v50 }
 0x229   :  { %v742_v35 = vadd.f32 %v726_v14, %v2523_v11  ;;  %v679_v45 = vunpack.c.l.bf16 %v663_v63  ;;  %v545_v62 = vpop.f32.mrf.mxu3  ;;  %v542_v26 = vpop.f32.mrf.mxu0 }
 0x22a   :  { %v616_v31 = vpack.c.bf16 %v600_v58, %v600_v58  ;;  %v546_v0 = vadd.f32 %v2341_v47, %v545_v62  ;;  %v543_v2 = vadd.f32 %v2341_v47, %v542_v26 }
 0x22b   :  { %v758_v49 = vpack.c.bf16 %v742_v35, %v742_v35  ;;  %v695_v61 = vmul.f32 0.044677734, %v679_v45 }
 0x22c   :  { %v632_v9 = vunpack.c.l.bf16 %v616_v31  ;;  %v570_v25 = vpack.c.bf16 %v546_v0, %v546_v0  ;;  %v569_v42 = vpack.c.bf16 %v543_v2, %v543_v2 }
 0x22d   :  { %v774_v3 = vunpack.c.l.bf16 %v758_v49  ;;  %v711_v7 = vpack.c.bf16 %v695_v61, %v695_v61 }
 0x22e   :  { %v648_v1 = vmul.f32 %v632_v9, %v2535_v50  ;;  %v2543_v40 = vunpack.c.l.bf16 %v570_v25  ;;  %v2545_v18 = vunpack.c.l.bf16 %v569_v42 }
 0x22f   :  { %v790_v59 = vmul.f32 0.796875, %v774_v3  ;;  %v727_v17 = vunpack.c.l.bf16 %v711_v7 }
 0x230   :  { %v664_v34 = vpack.c.bf16 %v648_v1, %v648_v1  ;;  %v602_v24 = vmul.f32 %v2543_v40, %v2543_v40  ;;  %v601_v5 = vmul.f32 %v2545_v18, %v2545_v18 }
 0x231   :  { %v806_v4 = vpack.c.bf16 %v790_v59, %v790_v59  ;;  %v743_v19 = vadd.f32 %v727_v17, %v2529_v37  ;;  %v547_v28 = vpop.f32.mrf.mxu3 }
 0x232   :  { %v680_v27 = vunpack.c.l.bf16 %v664_v34  ;;  %v618_v29 = vpack.c.bf16 %v602_v24, %v602_v24  ;;  %v617_v48 = vpack.c.bf16 %v601_v5, %v601_v5  ;;  %v548_v13 = vadd.f32 %v2341_v47, %v547_v28 }
 0x233   :  { %v822_v56 = vunpack.c.l.bf16 %v806_v4  ;;  %v759_v46 = vpack.c.bf16 %v743_v19, %v743_v19 }
 0x234   :  { %v696_v21 = vmul.f32 0.044677734, %v680_v27  ;;  %v634_v53 = vunpack.c.l.bf16 %v618_v29  ;;  %v633_v57 = vunpack.c.l.bf16 %v617_v48  ;;  %v571_v22 = vpack.c.bf16 %v548_v13, %v548_v13 }
 0x235   :  { %1848 = vtanh.f32 %v822_v56  ;;  %v775_v43 = vunpack.c.l.bf16 %v759_v46 }
 0x236   :  { %v712_v6 = vpack.c.bf16 %v696_v21, %v696_v21  ;;  %v650_v10 = vmul.f32 %v634_v53, %v2543_v40  ;;  %v649_v15 = vmul.f32 %v633_v57, %v2545_v18  ;;  %v2555_v32 = vunpack.c.l.bf16 %v571_v22 }
 0x237   :  { %v791_v30 = vmul.f32 0.796875, %v775_v43 }
 0x238   :  { %v728_v12 = vunpack.c.l.bf16 %v712_v6  ;;  %v666_v23 = vpack.c.bf16 %v650_v10, %v650_v10  ;;  %v665_v55 = vpack.c.bf16 %v649_v15, %v649_v15  ;;  %v603_v8 = vmul.f32 %v2555_v32, %v2555_v32 }
 0x239   :  { %v807_v36 = vpack.c.bf16 %v791_v30, %v791_v30  ;;  %v550_v41 = vpop.f32.mrf.mxu3 }
 0x23a   :  { %v744_v51 = vadd.f32 %v728_v12, %v2535_v50  ;;  %v682_v52 = vunpack.c.l.bf16 %v666_v23  ;;  %v681_v39 = vunpack.c.l.bf16 %v665_v55  ;;  %v619_v60 = vpack.c.bf16 %v603_v8, %v603_v8 }
 0x23b   :  { %v1849_v38 = vpop.eup %1848  ;;  %v823_v33 = vunpack.c.l.bf16 %v807_v36  ;;  %v551_v54 = vadd.f32 %v2341_v47, %v550_v41 }
 0x23c   :  { %v854_v16 = vpack.c.bf16 %v1849_v38, %v1849_v38  ;;  %v760_v44 = vpack.c.bf16 %v744_v51, %v744_v51  ;;  %v698_v14 = vmul.f32 0.044677734, %v682_v52  ;;  %v697_v63 = vmul.f32 0.044677734, %v681_v39 }
 0x23d   :  { %1850 = vtanh.f32 %v823_v33  ;;  %v635_v35 = vunpack.c.l.bf16 %v619_v60  ;;  %v572_v45 = vpack.c.bf16 %v551_v54, %v551_v54 }
 0x23e   :  { %v870_v58 = vunpack.c.l.bf16 %v854_v16  ;;  %v776_v49 = vunpack.c.l.bf16 %v760_v44  ;;  %v714_v61 = vpack.c.bf16 %v698_v14, %v698_v14  ;;  %v713_v62 = vpack.c.bf16 %v697_v63, %v697_v63 }
 0x23f   :  { %v651_v26 = vmul.f32 %v635_v35, %v2555_v32  ;;  %v2562_v31 = vunpack.c.l.bf16 %v572_v45 }
 0x240   :  { %v886_v0 = vadd.f32 1.0, %v870_v58  ;;  %v792_v2 = vmul.f32 0.796875, %v776_v49  ;;  %v730_v3 = vunpack.c.l.bf16 %v714_v61  ;;  %v729_v7 = vunpack.c.l.bf16 %v713_v62 }
 0x241   :  { %v667_v9 = vpack.c.bf16 %v651_v26, %v651_v26  ;;  %v604_v42 = vmul.f32 %v2562_v31, %v2562_v31  ;;  %v552_v59 = vpop.f32.mrf.mxu3 }
 0x242   :  { %v902_v17 = vpack.c.bf16 %v886_v0, %v886_v0  ;;  %v808_v1 = vpack.c.bf16 %v792_v2, %v792_v2  ;;  %v746_v4 = vadd.f32 %v730_v3, %v2543_v40  ;;  %v745_v19 = vadd.f32 %v729_v7, %v2545_v18 }
 0x243   :  { %v1851_v25 = vpop.eup %1850  ;;  %v683_v34 = vunpack.c.l.bf16 %v667_v9  ;;  %v620_v24 = vpack.c.bf16 %v604_v42, %v604_v42  ;;  %v553_v5 = vadd.f32 %v2341_v47, %v552_v59 }
 0x244   :  { %v855_v56 = vpack.c.bf16 %v1851_v25, %v1851_v25  ;;  %v918_v46 = vunpack.c.l.bf16 %v902_v17  ;;  %v824_v28 = vunpack.c.l.bf16 %v808_v1  ;;  %v762_v27 = vpack.c.bf16 %v746_v4, %v746_v4 }
 0x245   :  { %v761_v29 = vpack.c.bf16 %v745_v19, %v745_v19  ;;  %v699_v48 = vmul.f32 0.044677734, %v683_v34  ;;  %v636_v13 = vunpack.c.l.bf16 %v620_v24  ;;  %v573_v43 = vpack.c.bf16 %v553_v5, %v553_v5 }
 0x246   :  { %v871_v21 = vunpack.c.l.bf16 %v855_v56  ;;  %v934_v53 = vmul.f32 0.5, %v918_v46  ;;  %1852 = vtanh.f32 %v824_v28  ;;  %v778_v57 = vunpack.c.l.bf16 %v762_v27 }
 0x247   :  { %v777_v22 = vunpack.c.l.bf16 %v761_v29  ;;  %v715_v30 = vpack.c.bf16 %v699_v48, %v699_v48  ;;  %v652_v6 = vmul.f32 %v636_v13, %v2562_v31  ;;  %v2570_v10 = vunpack.c.l.bf16 %v573_v43 }
 0x248   :  { %v887_v15 = vadd.f32 1.0, %v871_v21  ;;  %v794_v36 = vmul.f32 0.796875, %v778_v57  ;;  %v950_v41 = vpack.c.bf16 %v934_v53, %v934_v53 }
 0x249   :  { %v793_v12 = vmul.f32 0.796875, %v777_v22  ;;  %v731_v23 = vunpack.c.l.bf16 %v715_v30  ;;  %v668_v55 = vpack.c.bf16 %v652_v6, %v652_v6  ;;  %v605_v8 = vmul.f32 %v2570_v10, %v2570_v10  ;;  %v555_v38 = vpop.f32.mrf.mxu3 }
 0x24a   :  { %v903_v33 = vpack.c.bf16 %v887_v15, %v887_v15  ;;  %v810_v51 = vpack.c.bf16 %v794_v36, %v794_v36  ;;  %v556_v60 = vadd.f32 %v2341_v47, %v555_v38  ;;  %v966_v3 = vunpack.c.l.bf16 %v950_v41 }
 0x24b   :  { %v809_v52 = vpack.c.bf16 %v793_v12, %v793_v12  ;;  %v747_v39 = vadd.f32 %v731_v23, %v2555_v32  ;;  %v684_v54 = vunpack.c.l.bf16 %v668_v55  ;;  %v621_v16 = vpack.c.bf16 %v605_v8, %v605_v8 }
 0x24c   :  { %v919_v44 = vunpack.c.l.bf16 %v903_v33  ;;  %v1853_v14 = vpop.eup %1852  ;;  %v826_v63 = vunpack.c.l.bf16 %v810_v51  ;;  %v574_v58 = vpack.c.bf16 %v556_v60, %v556_v60  ;;  %v982_v29 = vmul.f32 %v966_v3, %v2523_v11  ;;  %v1900_v3 = vld [vmem:[%s3047_s0] sm:$0xff] }
 0x24d   :  { %v825_v35 = vunpack.c.l.bf16 %v809_v52  ;;  %v763_v45 = vpack.c.bf16 %v747_v39, %v747_v39  ;;  %v700_v49 = vmul.f32 0.044677734, %v684_v54  ;;  %v637_v61 = vunpack.c.l.bf16 %v621_v16 }
 0x24e   :  { %v935_v62 = vmul.f32 0.5, %v919_v44  ;;  %v856_v26 = vpack.c.bf16 %v1853_v14, %v1853_v14  ;;  %1854 = vtanh.f32 %v826_v63  ;;  %v2576_v2 = vunpack.c.l.bf16 %v574_v58  ;;  %v2595_v63 = vld [vmem:[%s3053_s6] ss:$0 sm:$0xff] }
 0x24f   :  { %v779_v0 = vunpack.c.l.bf16 %v763_v45  ;;  %1856 = vtanh.f32 %v825_v35  ;;  %v716_v7 = vpack.c.bf16 %v700_v49, %v700_v49  ;;  %v653_v9 = vmul.f32 %v637_v61, %v2570_v10 }
 0x250   :  { %v951_v25 = vpack.c.bf16 %v935_v62, %v935_v62  ;;  %v606_v59 = vmul.f32 %v2576_v2, %v2576_v2  ;;  %v872_v17 = vunpack.c.l.bf16 %v856_v26 }
 0x251   :  { %v795_v42 = vmul.f32 0.796875, %v779_v0  ;;  %v732_v1 = vunpack.c.l.bf16 %v716_v7  ;;  %v669_v4 = vpack.c.bf16 %v653_v9, %v653_v9  ;;  %v557_v19 = vpop.f32.mrf.mxu3 }
 0x252   :  { %v967_v34 = vunpack.c.l.bf16 %v951_v25  ;;  %v622_v5 = vpack.c.bf16 %v606_v59, %v606_v59  ;;  %v558_v56 = vadd.f32 %v2341_v47, %v557_v19  ;;  %v888_v46 = vadd.f32 1.0, %v872_v17 }
 0x253   :  { %v811_v24 = vpack.c.bf16 %v795_v42, %v795_v42  ;;  %v748_v28 = vadd.f32 %v732_v1, %v2562_v31  ;;  %v685_v27 = vunpack.c.l.bf16 %v669_v4 }
 0x254   :  { %v983_v48 = vmul.f32 %v967_v34, %v2529_v37  ;;  %v1855_v13 = vpop.eup %1854  ;;  %v638_v21 = vunpack.c.l.bf16 %v622_v5  ;;  %v575_v53 = vpack.c.bf16 %v558_v56, %v558_v56  ;;  %v904_v57 = vpack.c.bf16 %v888_v46, %v888_v46 }
 0x255   :  { %v827_v43 = vunpack.c.l.bf16 %v811_v24  ;;  %v1857_v22 = vpop.eup %1856  ;;  %v764_v30 = vpack.c.bf16 %v748_v28, %v748_v28  ;;  %v701_v6 = vmul.f32 0.044677734, %v685_v27  ;;  %v858_v36 = vpack.c.bf16 %v1855_v13, %v1855_v13 }
 0x256   :  { %v995_v15 = vpack.c.bf16 %v983_v48, %v982_v29  ;;  %v654_v47 = vmul.f32 %v638_v21, %v2576_v2  ;;  %v2586_v12 = vunpack.c.l.bf16 %v575_v53  ;;  %v857_v23 = vpack.c.bf16 %v1857_v22, %v1857_v22 }
 0x257   :  { %1858 = vtanh.f32 %v827_v43  ;;  %v780_v55 = vunpack.c.l.bf16 %v764_v30  ;;  %v717_v11 = vpack.c.bf16 %v701_v6, %v701_v6  ;;  %v920_v37 = vunpack.c.l.bf16 %v904_v57 }
 0x258   :  { %1774 = vmatmul.msk.bf16.gmra.mxu1 %vm1032_vm5, %v995_v15  ;;  %v670_v8 = vpack.c.bf16 %v654_v47, %v654_v47  ;;  %v607_v38 = vmul.f32 %v2586_v12, %v2586_v12  ;;  %v873_v33 = vunpack.c.l.bf16 %v857_v23  ;;  %v874_v41 = vunpack.c.l.bf16 %v858_v36  ;;  %v1901_v47 = vld [vmem:[%s3047_s0 + $0x8] sm:$0xff] }
 0x259   :  { %v796_v51 = vmul.f32 0.796875, %v780_v55  ;;  %v733_v52 = vunpack.c.l.bf16 %v717_v11  ;;  %v936_v39 = vmul.f32 0.5, %v920_v37 }
 0x25a   :  { %v686_v60 = vunpack.c.l.bf16 %v670_v8  ;;  %v623_v54 = vpack.c.bf16 %v607_v38, %v607_v38  ;;  %v889_v16 = vadd.f32 1.0, %v873_v33  ;;  %v890_v62 = vadd.f32 1.0, %v874_v41 }
 0x25b   :  { %v812_v44 = vpack.c.bf16 %v796_v51, %v796_v51  ;;  %v749_v14 = vadd.f32 %v733_v52, %v2570_v10  ;;  %v952_v9 = vpack.c.bf16 %v936_v39, %v936_v39 }
 0x25c   :  { %v702_v45 = vmul.f32 0.044677734, %v686_v60  ;;  %v639_v58 = vunpack.c.l.bf16 %v623_v54  ;;  %v905_v61 = vpack.c.bf16 %v889_v16, %v889_v16  ;;  %v906_v27 = vpack.c.bf16 %v890_v62, %v890_v62  ;;  %v1902_v62 = vld [vmem:[%s3047_s0 + $0x10] sm:$0xff] }
 0x25d   :  { %v1859_v35 = vpop.eup %1858  ;;  %v1066_v49 = vpop.f32.mrf.mxu1  ;;  %v828_v26 = vunpack.c.l.bf16 %v812_v44  ;;  %v765_v0 = vpack.c.bf16 %v749_v14, %v749_v14  ;;  %v968_v28 = vunpack.c.l.bf16 %v952_v9 }
 0x25e   :  { %v1106_v7 = vadd.f32 %v1900_v3, %v1066_v49  ;;  %v718_v25 = vpack.c.bf16 %v702_v45, %v702_v45  ;;  %v655_v42 = vmul.f32 %v639_v58, %v2586_v12  ;;  %v921_v59 = vunpack.c.l.bf16 %v905_v61 }
 0x25f   :  { %v859_v17 = vpack.c.bf16 %v1859_v35, %v1859_v35  ;;  %1860 = vtanh.f32 %v828_v26  ;;  %v781_v1 = vunpack.c.l.bf16 %v765_v0  ;;  %v984_v55 = vmul.f32 %v968_v28, %v2535_v50 }
 0x260   :  { %v2602_v4 = vadd.f32 %v2595_v63, %v1106_v7  ;;  %v734_v19 = vunpack.c.l.bf16 %v718_v25  ;;  %v671_v34 = vpack.c.bf16 %v655_v42, %v655_v42  ;;  %v937_v24 = vmul.f32 0.5, %v921_v59 }
 0x261   :  { %v875_v5 = vunpack.c.l.bf16 %v859_v17  ;;  %v797_v56 = vmul.f32 0.796875, %v781_v1  ;;  %v922_v11 = vunpack.c.l.bf16 %v906_v27 }
 0x262   :  { %1142 = vst.msk [vmem:[#allocation3] sm:$0xff] %vm61_vm0, %v2602_v4  ;;  %v1160_v46 = vsel %vm61_vm0, %v2602_v4, 0.0  ;;  %v750_v29 = vadd.f32 %v734_v19, %v2576_v2  ;;  %v687_v48 = vunpack.c.l.bf16 %v671_v34  ;;  %v953_v13 = vpack.c.bf16 %v937_v24, %v937_v24 }
 0x263   :  { %1161 = vadd.xlane.f32.xlu2 %v1160_v46  ;;  %v891_v43 = vadd.f32 1.0, %v875_v5  ;;  %v813_v21 = vpack.c.bf16 %v797_v56, %v797_v56  ;;  %v938_v16 = vmul.f32 0.5, %v922_v11 }
 0x264   :  { %v766_v53 = vpack.c.bf16 %v750_v29, %v750_v29  ;;  %v703_v57 = vmul.f32 0.044677734, %v687_v48  ;;  %v969_v30 = vunpack.c.l.bf16 %v953_v13  ;;  %v1903_v48 = vld [vmem:[%s3047_s0 + $0x18] sm:$0xff] }
 0x265   :  { %v1068_v22 = vpop.f32.mrf.mxu1  ;;  %v907_v6 = vpack.c.bf16 %v891_v43, %v891_v43  ;;  %v1861_v15 = vpop.eup %1860  ;;  %v829_v36 = vunpack.c.l.bf16 %v813_v21  ;;  %v954_v0 = vpack.c.bf16 %v938_v16, %v938_v16 }
 0x266   :  { %v1107_v23 = vadd.f32 %v1901_v47, %v1068_v22  ;;  %v782_v37 = vunpack.c.l.bf16 %v766_v53  ;;  %v719_v8 = vpack.c.bf16 %v703_v57, %v703_v57  ;;  %v985_v38 = vmul.f32 %v969_v30, %v2545_v18 }
 0x267   :  { %v923_v33 = vunpack.c.l.bf16 %v907_v6  ;;  %1862 = vtanh.f32 %v829_v36  ;;  %v860_v51 = vpack.c.bf16 %v1861_v15, %v1861_v15  ;;  %v970_v19 = vunpack.c.l.bf16 %v954_v0 }
 0x268   :  { %v2615_v41 = vadd.f32 %v2595_v63, %v1107_v23  ;;  %v798_v52 = vmul.f32 0.796875, %v782_v37  ;;  %v735_v39 = vunpack.c.l.bf16 %v719_v8  ;;  %v996_v60 = vpack.c.bf16 %v985_v38, %v984_v55  ;;  %v1904_v55 = vld [vmem:[%s3047_s0 + $0x20] sm:$0xff] }
 0x269   :  { %v939_v54 = vmul.f32 0.5, %v923_v33  ;;  %v876_v14 = vunpack.c.l.bf16 %v860_v51  ;;  %v986_v43 = vmul.f32 %v970_v19, %v2543_v40  ;;  %v1906_v19 = vld [vmem:[%s3047_s0 + $0x30] sm:$0xff] }
 0x26a   :  { %1143 = vst.msk [vmem:[#allocation3 + $0x8] sm:$0xff] %vm61_vm0, %v2615_v41  ;;  %v1163_v50 = vsel %vm61_vm0, %v2615_v41, 0.0  ;;  %v814_v44 = vpack.c.bf16 %v798_v52, %v798_v52  ;;  %v751_v18 = vadd.f32 %v735_v39, %v2586_v12  ;;  %1775 = vmatmul.msk.bf16.vlgmr.msra.gmra.mxu2 %vm1032_vm5, %v996_v60 }
 0x26b   :  { %1164 = vadd.xlane.f32.xlu0 %v1163_v50  ;;  %v955_v49 = vpack.c.bf16 %v939_v54, %v939_v54  ;;  %v892_v9 = vadd.f32 1.0, %v876_v14  ;;  %v1905_v14 = vld [vmem:[%s3047_s0 + $0x28] sm:$0xff] }
 0x26c   :  { %v830_v35 = vunpack.c.l.bf16 %v814_v44  ;;  %v767_v45 = vpack.c.bf16 %v751_v18, %v751_v18 }
 0x26d   :  { %v1071_v58 = vpop.f32.mrf.mxu1  ;;  %v1863_v61 = vpop.eup %1862  ;;  %v971_v59 = vunpack.c.l.bf16 %v955_v49  ;;  %v908_v5 = vpack.c.bf16 %v892_v9, %v892_v9 }
 0x26e   :  { %v1108_v26 = vadd.f32 %v1902_v62, %v1071_v58  ;;  %1864 = vtanh.f32 %v830_v35  ;;  %v783_v3 = vunpack.c.l.bf16 %v767_v45  ;;  %v861_v7 = vpack.c.bf16 %v1863_v61, %v1863_v61 }
 0x26f   :  { %v987_v27 = vmul.f32 %v971_v59, %v2555_v32  ;;  %v924_v21 = vunpack.c.l.bf16 %v908_v5  ;;  %v1907_v5 = vld [vmem:[%s3047_s0 + $0x38] sm:$0xff] }
 0x270   :  { %v2627_v25 = vadd.f32 %v2595_v63, %v1108_v26  ;;  %v799_v42 = vmul.f32 0.796875, %v783_v3  ;;  %v877_v17 = vunpack.c.l.bf16 %v861_v7 }
 0x271   :  { %v997_v30 = vpack.c.bf16 %v987_v27, %v986_v43  ;;  %v940_v15 = vmul.f32 0.5, %v924_v21 }
 0x272   :  { %1144 = vst.msk [vmem:[#allocation3 + $0x10] sm:$0xff] %vm61_vm0, %v2627_v25  ;;  %v1166_v1 = vsel %vm61_vm0, %v2627_v25, 0.0  ;;  %v815_v34 = vpack.c.bf16 %v799_v42, %v799_v42  ;;  %v893_v24 = vadd.f32 1.0, %v877_v17 }
 0x273   :  { %1167 = vadd.xlane.f32.xlu1 %v1166_v1  ;;  %v956_v8 = vpack.c.bf16 %v940_v15, %v940_v15  ;;  %v1910_v15 = vld [vmem:[%s3047_s0 + $0x50] sm:$0xff] }
 0x274   :  { %v1865_v56 = vpop.eup %1864  ;;  %v831_v46 = vunpack.c.l.bf16 %v815_v34  ;;  %v909_v29 = vpack.c.bf16 %v893_v24, %v893_v24 }
 0x275   :  { %v1073_v28 = vpop.f32.mrf.mxu1  ;;  %v862_v57 = vpack.c.bf16 %v1865_v56, %v1865_v56  ;;  %v972_v54 = vunpack.c.l.bf16 %v956_v8 }
 0x276   :  { %v1109_v13 = vadd.f32 %v1903_v48, %v1073_v28  ;;  %1866 = vtanh.f32 %v831_v46  ;;  %v925_v53 = vunpack.c.l.bf16 %v909_v29  ;;  %v1908_v29 = vld [vmem:[%s3047_s0 + $0x40] sm:$0xff] }
 0x277   :  { %v878_v40 = vunpack.c.l.bf16 %v862_v57  ;;  %v988_v58 = vmul.f32 %v972_v54, %v2562_v31 }
 0x278   :  { %v2639_v22 = vadd.f32 %v2595_v63, %v1109_v13  ;;  %v941_v6 = vmul.f32 0.5, %v925_v53  ;;  %v1909_v53 = vld [vmem:[%s3047_s0 + $0x48] sm:$0xff] }
 0x279   :  { %v894_v38 = vadd.f32 1.0, %v878_v40 }
 0x27a   :  { %1145 = vst.msk [vmem:[#allocation3 + $0x18] sm:$0xff] %vm61_vm0, %v2639_v22  ;;  %v1169_v32 = vsel %vm61_vm0, %v2639_v22, 0.0  ;;  %1776 = vmatmul.msk.bf16.gmra.mxu2 %vm1032_vm5, %v997_v30  ;;  %v957_v23 = vpack.c.bf16 %v941_v6, %v941_v6 }
 0x27b   :  { %1170 = vadd.xlane.f32.xlu2 %v1169_v32  ;;  %v910_v50 = vpack.c.bf16 %v894_v38, %v894_v38 }
 0x27c   :  { %v1867_v36 = vpop.eup %1866  ;;  %v973_v52 = vunpack.c.l.bf16 %v957_v23 }
 0x27d   :  { %v1076_v47 = vpop.f32.mrf.mxu1  ;;  %v863_v37 = vpack.c.bf16 %v1867_v36, %v1867_v36  ;;  %v926_v49 = vunpack.c.l.bf16 %v910_v50 }
 0x27e   :  { %v1110_v11 = vadd.f32 %v1904_v55, %v1076_v47  ;;  %v989_v18 = vmul.f32 %v973_v52, %v2570_v10  ;;  %v1911_v55 = vld [vmem:[%s3047_s0 + $0x58] sm:$0xff] }
 0x27f   :  { %v879_v51 = vunpack.c.l.bf16 %v863_v37  ;;  %v942_v0 = vmul.f32 0.5, %v926_v49 }
 0x280   :  { %v2650_v33 = vadd.f32 %v2595_v63, %v1110_v11  ;;  %v998_v62 = vpack.c.bf16 %v989_v18, %v988_v58 }
 0x281   :  { %v895_v60 = vadd.f32 1.0, %v879_v51  ;;  %v958_v7 = vpack.c.bf16 %v942_v0, %v942_v0  ;;  %v1912_v51 = vld [vmem:[%s3047_s0 + $0x60] sm:$0xff] }
 0x282   :  { %1146 = vst.msk [vmem:[#allocation3 + $0x20] sm:$0xff] %vm61_vm0, %v2650_v33  ;;  %v1172_v39 = vsel %vm61_vm0, %v2650_v33, 0.0 }
 0x283   :  { %1173 = vadd.xlane.f32.xlu0 %v1172_v39  ;;  %v911_v16 = vpack.c.bf16 %v895_v60, %v895_v60  ;;  %v974_v31 = vunpack.c.l.bf16 %v958_v7 }
 0x285   :  { %v1078_v44 = vpop.f32.mrf.mxu1  ;;  %v927_v45 = vunpack.c.l.bf16 %v911_v16  ;;  %v990_v59 = vmul.f32 %v974_v31, %v2576_v2 }
 0x286   :  { %v1111_v35 = vadd.f32 %v1905_v14, %v1078_v44  ;;  %v1913_v44 = vld [vmem:[%s3047_s0 + $0x68] sm:$0xff] }
 0x287   :  { %v943_v26 = vmul.f32 0.5, %v927_v45 }
 0x288   :  { %v2662_v61 = vadd.f32 %v2595_v63, %v1111_v35 }
 0x289   :  { %v959_v3 = vpack.c.bf16 %v943_v26, %v943_v26 }
 0x28a   :  { %1147 = vst.msk [vmem:[#allocation3 + $0x28] sm:$0xff] %vm61_vm0, %v2662_v61  ;;  %v1175_v10 = vsel %vm61_vm0, %v2662_v61, 0.0  ;;  %1777 = vmatmul.msk.bf16.gmra.mxu2 %vm1032_vm5, %v998_v62 }
 0x28b   :  { %1176 = vadd.xlane.f32.xlu1 %v1175_v10  ;;  %v975_v9 = vunpack.c.l.bf16 %v959_v3  ;;  %v1914_v10 = vld [vmem:[%s3047_s0 + $0x70] sm:$0xff] }
 0x28d   :  { %v991_v42 = vmul.f32 %v975_v9, %v2586_v12 }
 0x28f   :  { %v999_v17 = vpack.c.bf16 %v991_v42, %v990_v59 }
 0x29a   :  { %1778 = vmatmul.msk.bf16.gmra.mxu2 %vm1032_vm5, %v999_v17 }
 0x2d5   :  { %v1081_v1 = vpop.f32.mrf.mxu1 }
 0x2d6   :  { %v1112_v34 = vadd.f32 %v1906_v19, %v1081_v1  ;;  %v1162_v54 = vpop.xlane.xlu2 %1161 }
 0x2d7   :  { %v1208_v16 = vmul.f32 %v1162_v54, %v2042_v20 }
 0x2d8   :  { %v2676_v24 = vadd.f32 %v2595_v63, %v1112_v34 }
 0x2d9   :  { %v2750_v35 = vsub.f32 %v2602_v4, %v1208_v16 }
 0x2da   :  { %1148 = vst.msk [vmem:[#allocation3 + $0x30] sm:$0xff] %vm61_vm0, %v2676_v24  ;;  %v1178_v12 = vsel %vm61_vm0, %v2676_v24, 0.0 }
 0x2db   :  { %1179 = vadd.xlane.f32.xlu2 %v1178_v12  ;;  %v1240_v4 = vmul.f32 %v2750_v35, %v2750_v35 }
 0x2dd   :  { %v1083_v2 = vpop.f32.mrf.mxu1  ;;  %v1256_v31 = vsel %vm61_vm0, %v1240_v4, 0.0 }
 0x2de   :  { %v1113_v56 = vadd.f32 %v1907_v5, %v1083_v2  ;;  %v1165_v49 = vpop.xlane.xlu0 %1164 }
 0x2df   :  { %v1209_v3 = vmul.f32 %v1165_v49, %v2042_v20 }
 0x2e0   :  { %v2686_v46 = vadd.f32 %v2595_v63, %v1113_v56 }
 0x2e1   :  { %v2775_v59 = vsub.f32 %v2615_v41, %v1209_v3 }
 0x2e2   :  { %1149 = vst.msk [vmem:[#allocation3 + $0x38] sm:$0xff] %vm61_vm0, %v2686_v46  ;;  %v1181_v28 = vsel %vm61_vm0, %v2686_v46, 0.0 }
 0x2e3   :  { %1182 = vadd.xlane.f32.xlu0 %v1181_v28  ;;  %v1241_v41 = vmul.f32 %v2775_v59, %v2775_v59 }
 0x2e6   :  { %v1168_v17 = vpop.xlane.xlu1 %1167 }
 0x2e7   :  { %v1210_v34 = vmul.f32 %v1168_v17, %v2042_v20 }
 0x2e9   :  { %v2790_v28 = vsub.f32 %v2627_v25, %v1210_v34 }
 0x2ed   :  { %v1086_v27 = vpop.f32.mrf.mxu2 }
 0x2ee   :  { %v1114_v48 = vadd.f32 %v1908_v29, %v1086_v27  ;;  %v1171_v58 = vpop.xlane.xlu2 %1170 }
 0x2ef   :  { %v1211_v26 = vmul.f32 %v1171_v58, %v2042_v20 }
 0x2f0   :  { %v2696_v13 = vadd.f32 %v2595_v63, %v1114_v48 }
 0x2f1   :  { %v2767_v9 = vsub.f32 %v2639_v22, %v1211_v26  ;;  %v1915_v22 = vld [vmem:[%s3047_s0 + $0x78] sm:$0xff] }
 0x2f2   :  { %1150 = vst.msk [vmem:[#allocation3 + $0x40] sm:$0xff] %vm61_vm0, %v2696_v13  ;;  %v1184_v43 = vsel %vm61_vm0, %v2696_v13, 0.0 }
 0x2f3   :  { %1185 = vadd.xlane.f32.xlu1 %v1184_v43  ;;  %v1243_v2 = vmul.f32 %v2767_v9, %v2767_v9 }
 0x2f5   :  { %v1088_v21 = vpop.f32.mrf.mxu2  ;;  %v1265_v27 = vsel %vm61_vm0, %v1243_v2, 0.0 }
 0x2f6   :  { %v1115_v57 = vadd.f32 %v1909_v53, %v1088_v21  ;;  %v1174_v1 = vpop.xlane.xlu0 %1173  ;;  %v1242_v21 = vmul.f32 %v2790_v28, %v2790_v28 }
 0x2f7   :  { %v1212_v5 = vmul.f32 %v1174_v1, %v2042_v20 }
 0x2f8   :  { %v2706_v30 = vadd.f32 %v2595_v63, %v1115_v57 }
 0x2f9   :  { %v2798_v48 = vsub.f32 %v2650_v33, %v1212_v5  ;;  %v1262_v33 = vsel %vm61_vm0, %v1242_v21, 0.0 }
 0x2fa   :  { %1151 = vst.msk [vmem:[#allocation3 + $0x48] sm:$0xff] %vm61_vm0, %v2706_v30  ;;  %v1187_v6 = vsel %vm61_vm0, %v2706_v30, 0.0 }
 0x2fb   :  { %1188 = vadd.xlane.f32.xlu2 %v1187_v6  ;;  %v1244_v53 = vmul.f32 %v2798_v48, %v2798_v48 }
 0x2fd   :  { %v1091_v32 = vpop.f32.mrf.mxu2  ;;  %v1268_v6 = vsel %vm61_vm0, %v1244_v53, 0.0 }
 0x2fe   :  { %v1116_v40 = vadd.f32 %v1910_v15, %v1091_v32  ;;  %v1177_v43 = vpop.xlane.xlu1 %1176 }
 0x2ff   :  { %v1213_v25 = vmul.f32 %v1177_v43, %v2042_v20 }
 0x300   :  { %v2716_v36 = vadd.f32 %v2595_v63, %v1116_v40 }
 0x301   :  { %v2807_v57 = vsub.f32 %v2662_v61, %v1213_v25 }
 0x302   :  { %1152 = vst.msk [vmem:[#allocation3 + $0x50] sm:$0xff] %vm61_vm0, %v2716_v36  ;;  %v1190_v47 = vsel %vm61_vm0, %v2716_v36, 0.0 }
 0x303   :  { %1191 = vadd.xlane.f32.xlu0 %v1190_v47  ;;  %v1245_v32 = vmul.f32 %v2807_v57, %v2807_v57 }
 0x305   :  { %v1093_v23 = vpop.f32.mrf.mxu2  ;;  %v1271_v15 = vsel %vm61_vm0, %v1245_v32, 0.0 }
 0x306   :  { %v1117_v11 = vadd.f32 %v1911_v55, %v1093_v23 }
 0x308   :  { %v2726_v37 = vadd.f32 %v2595_v63, %v1117_v11 }
 0x30a   :  { %1153 = vst.msk [vmem:[#allocation3 + $0x58] sm:$0xff] %vm61_vm0, %v2726_v37  ;;  %v1193_v8 = vsel %vm61_vm0, %v2726_v37, 0.0 }
 0x30b   :  { %1194 = vadd.xlane.f32.xlu1 %v1193_v8 }
 0x30d   :  { %v1096_v38 = vpop.f32.mrf.mxu2 }
 0x30e   :  { %v1118_v52 = vadd.f32 %v1912_v51, %v1096_v38 }
 0x310   :  { %v2736_v39 = vadd.f32 %v2595_v63, %v1118_v52 }
 0x312   :  { %1154 = vst.msk [vmem:[#allocation3 + $0x60] sm:$0xff] %vm61_vm0, %v2736_v39  ;;  %v1196_v60 = vsel %vm61_vm0, %v2736_v39, 0.0 }
 0x313   :  { %1197 = vadd.xlane.f32.xlu2 %v1196_v60 }
 0x315   :  { %v1098_v50 = vpop.f32.mrf.mxu2 }
 0x316   :  { %v1119_v18 = vadd.f32 %v1913_v44, %v1098_v50 }
 0x318   :  { %v2747_v14 = vadd.f32 %v2595_v63, %v1119_v18 }
 0x31a   :  { %1155 = vst.msk [vmem:[#allocation3 + $0x68] sm:$0xff] %vm61_vm0, %v2747_v14  ;;  %v1199_v45 = vsel %vm61_vm0, %v2747_v14, 0.0 }
 0x31b   :  { %1200 = vadd.xlane.f32.xlu0 %v1199_v45 }
 0x31d   :  { %v1101_v62 = vpop.f32.mrf.mxu2 }
 0x31e   :  { %v1120_v0 = vadd.f32 %v1914_v10, %v1101_v62 }
 0x320   :  { %v2764_v7 = vadd.f32 %v2595_v63, %v1120_v0 }
 0x322   :  { %1156 = vst.msk [vmem:[#allocation3 + $0x70] sm:$0xff] %vm61_vm0, %v2764_v7  ;;  %v1202_v42 = vsel %vm61_vm0, %v2764_v7, 0.0 }
 0x323   :  { %1257 = vadd.xlane.f32.xlu0 %v1256_v31  ;;  %1203 = vadd.xlane.f32.xlu1 %v1202_v42 }
 0x325   :  { %v1103_v19 = vpop.f32.mrf.mxu2 }
 0x326   :  { %v1121_v12 = vadd.f32 %v1915_v22, %v1103_v19 }
 0x328   :  { %v2787_v56 = vadd.f32 %v2595_v63, %v1121_v12  ;;  %v1259_v63 = vsel %vm61_vm0, %v1241_v41, 0.0 }
 0x32a   :  { %1157 = vst.msk [vmem:[#allocation3 + $0x78] sm:$0xff] %vm61_vm0, %v2787_v56  ;;  %v1205_v29 = vsel %vm61_vm0, %v2787_v56, 0.0 }
 0x32b   :  { %1266 = vadd.xlane.f32.xlu0 %v1265_v27  ;;  %1206 = vadd.xlane.f32.xlu2 %v1205_v29 }
 0x32c   :  { %1260 = vadd.xlane.f32.xlu1 %v1259_v63 }
 0x333   :  { %1263 = vadd.xlane.f32.xlu2 %v1262_v33 }
 0x334   :  { %1269 = vadd.xlane.f32.xlu1 %v1268_v6 }
 0x33b   :  { %1272 = vadd.xlane.f32.xlu2 %v1271_v15 }
 0x34e   :  { %v1180_v40 = vpop.xlane.xlu2 %1179 }
 0x34f   :  { %v1214_v47 = vmul.f32 %v1180_v40, %v2042_v20 }
 0x351   :  { %v2816_v23 = vsub.f32 %v2676_v24, %v1214_v47 }
 0x353   :  { %v1246_v61 = vmul.f32 %v2816_v23, %v2816_v23 }
 0x355   :  { %v1274_v55 = vsel %vm61_vm0, %v1246_v61, 0.0 }
 0x356   :  { %1275 = vadd.xlane.f32.xlu0 %v1274_v55  ;;  %v1183_v11 = vpop.xlane.xlu0 %1182 }
 0x357   :  { %v1215_v8 = vmul.f32 %v1183_v11, %v2042_v20 }
 0x359   :  { %v2823_v38 = vsub.f32 %v2686_v46, %v1215_v8 }
 0x35b   :  { %v1247_v51 = vmul.f32 %v2823_v38, %v2823_v38 }
 0x35d   :  { %v1277_v52 = vsel %vm61_vm0, %v1247_v51, 0.0 }
 0x35e   :  { %1278 = vadd.xlane.f32.xlu1 %v1277_v52 }
 0x366   :  { %v1186_v24 = vpop.xlane.xlu1 %1185 }
 0x367   :  { %v1216_v60 = vmul.f32 %v1186_v24, %v2042_v20 }
 0x369   :  { %v2830_v54 = vsub.f32 %v2696_v13, %v1216_v60 }
 0x36b   :  { %v1248_v50 = vmul.f32 %v2830_v54, %v2830_v54 }
 0x36d   :  { %v1280_v16 = vsel %vm61_vm0, %v1248_v50, 0.0 }
 0x36e   :  { %v1189_v44 = vpop.xlane.xlu2 %1188  ;;  %1281 = vadd.xlane.f32.xlu2 %v1280_v16 }
 0x36f   :  { %v1217_v46 = vmul.f32 %v1189_v44, %v2042_v20 }
 0x371   :  { %v2837_v18 = vsub.f32 %v2706_v30, %v1217_v46 }
 0x373   :  { %v1249_v45 = vmul.f32 %v2837_v18, %v2837_v18 }
 0x375   :  { %v1283_v58 = vsel %vm61_vm0, %v1249_v45, 0.0 }
 0x376   :  { %1284 = vadd.xlane.f32.xlu0 %v1283_v58  ;;  %v1192_v13 = vpop.xlane.xlu0 %1191 }
 0x377   :  { %v1218_v49 = vmul.f32 %v1192_v13, %v2042_v20 }
 0x379   :  { %v2844_v62 = vsub.f32 %v2716_v36, %v1218_v49 }
 0x37b   :  { %v1250_v26 = vmul.f32 %v2844_v62, %v2844_v62 }
 0x37d   :  { %v1286_v10 = vsel %vm61_vm0, %v1250_v26, 0.0  ;;  %v2894_v26 = vld [vmem:[%s3054_s7] ss:$0 sm:$0xff] }
 0x37e   :  { %v1195_v0 = vpop.xlane.xlu1 %1194  ;;  %1287 = vadd.xlane.f32.xlu1 %v1286_v10 }
 0x37f   :  { %v1219_v30 = vmul.f32 %v1195_v0, %v2042_v20 }
 0x381   :  { %v2851_v4 = vsub.f32 %v2726_v37, %v1219_v30 }
 0x383   :  { %v1251_v3 = vmul.f32 %v2851_v4, %v2851_v4 }
 0x385   :  { %v1289_v31 = vsel %vm61_vm0, %v1251_v3, 0.0 }
 0x386   :  { %v1198_v42 = vpop.xlane.xlu2 %1197  ;;  %1290 = vadd.xlane.f32.xlu2 %v1289_v31  ;;  %v2901_v31 = vld [vmem:[%s3055_s8] ss:$0 sm:$0xff] }
 0x387   :  { %v1220_v36 = vmul.f32 %v1198_v42, %v2042_v20 }
 0x389   :  { %v2858_v17 = vsub.f32 %v2736_v39, %v1220_v36 }
 0x38b   :  { %v1252_v1 = vmul.f32 %v2858_v17, %v2858_v17 }
 0x38d   :  { %v1292_v19 = vsel %vm61_vm0, %v1252_v1, 0.0 }
 0x38e   :  { %1293 = vadd.xlane.f32.xlu0 %v1292_v19  ;;  %v1201_v37 = vpop.xlane.xlu0 %1200 }
 0x38f   :  { %v1221_v34 = vmul.f32 %v1201_v37, %v2042_v20 }
 0x391   :  { %v2865_v22 = vsub.f32 %v2747_v14, %v1221_v34 }
 0x393   :  { %v1253_v12 = vmul.f32 %v2865_v22, %v2865_v22 }
 0x395   :  { %v1295_v2 = vsel %vm61_vm0, %v1253_v12, 0.0  ;;  %v2908_v12 = vld [vmem:[%s3056_s9] ss:$0 sm:$0xff] }
 0x396   :  { %v1204_v5 = vpop.xlane.xlu1 %1203  ;;  %1296 = vadd.xlane.f32.xlu1 %v1295_v2  ;;  %v1258_v39 = vpop.xlane.xlu0 %1257 }
 0x397   :  { %v1222_v41 = vmul.f32 %v1204_v5, %v2042_v20  ;;  %v1304_v27 = vmul.f32 %v1258_v39, %v2042_v20 }
 0x399   :  { %v2873_v29 = vsub.f32 %v2764_v7, %v1222_v41  ;;  %v1320_v43 = vadd.f32 1e-05, %v1304_v27 }
 0x39b   :  { %1868 = vrsqrt.f32 %v1320_v43  ;;  %v1254_v14 = vmul.f32 %v2873_v29, %v2873_v29  ;;  %vm1342_vm7 = vweird.f32 %v1320_v43 }
 0x39d   :  { %v1298_v63 = vsel %vm61_vm0, %v1254_v14, 0.0 }
 0x39e   :  { %1299 = vadd.xlane.f32.xlu2 %v1298_v63  ;;  %v1207_v25 = vpop.xlane.xlu2 %1206  ;;  %v1267_v21 = vpop.xlane.xlu0 %1266 }
 0x39f   :  { %v1223_v53 = vmul.f32 %v1207_v25, %v2042_v20  ;;  %v1261_v33 = vpop.xlane.xlu1 %1260  ;;  %v1307_v6 = vmul.f32 %v1267_v21, %v2042_v20 }
 0x3a0   :  { %v1305_v32 = vmul.f32 %v1261_v33, %v2042_v20 }
 0x3a1   :  { %v1869_v15 = vpop.eup %1868  ;;  %v2882_v7 = vsub.f32 %v2787_v56, %v1223_v53  ;;  %v1323_v40 = vadd.f32 1e-05, %v1307_v6 }
 0x3a2   :  { %v1337_v47 = vmul.f32 %v1869_v15, %v1320_v43  ;;  %v1321_v61 = vadd.f32 1e-05, %v1305_v32  ;;  %vm1343_vm6 = vweird.f32 %v1869_v15 }
 0x3a3   :  { %1870 = vrsqrt.f32 %v1323_v40  ;;  %v1255_v55 = vmul.f32 %v2882_v7, %v2882_v7  ;;  %vm1344_vm8 = vmor %vm1342_vm7, %vm1343_vm6  ;;  %vm1372_vm11 = vweird.f32 %v1323_v40 }
 0x3a4   :  { %v1338_v11 = vmul.f32 %v1869_v15, %v1337_v47  ;;  %1872 = vrsqrt.f32 %v1321_v61  ;;  %vm1352_vm12 = vweird.f32 %v1321_v61 }
 0x3a5   :  { %v1301_v8 = vsel %vm61_vm0, %v1255_v55, 0.0 }
 0x3a6   :  { %v1339_v51 = vmul.f32 0.5, %v1338_v11  ;;  %1302 = vadd.xlane.f32.xlu0 %v1301_v8  ;;  %v1264_v52 = vpop.xlane.xlu2 %1263 }
 0x3a7   :  { %v1306_v24 = vmul.f32 %v1264_v52, %v2042_v20  ;;  %v1270_v60 = vpop.xlane.xlu1 %1269 }
 0x3a8   :  { %v1340_v50 = vsub.f32 1.5, %v1339_v51  ;;  %v1308_v56 = vmul.f32 %v1270_v60, %v2042_v20 }
 0x3a9   :  { %v1871_v16 = vpop.eup %1870  ;;  %v1322_v44 = vadd.f32 1e-05, %v1306_v24 }
 0x3aa   :  { %v1873_v46 = vpop.eup %1872  ;;  %v1341_v45 = vmul.f32 %v1869_v15, %v1340_v50  ;;  %v1367_v58 = vmul.f32 %v1871_v16, %v1323_v40  ;;  %v2889_v13 = vadd.f32 1e-05, %v1308_v56  ;;  %vm1373_vm9 = vweird.f32 %v1871_v16 }
 0x3ab   :  { %v1347_v49 = vmul.f32 %v1873_v46, %v1321_v61  ;;  %1874 = vrsqrt.f32 %v1322_v44  ;;  %vm1353_vm10 = vweird.f32 %v1873_v46  ;;  %vm1374_vm13 = vmor %vm1372_vm11, %vm1373_vm9  ;;  %vm1362_vm2 = vweird.f32 %v1322_v44 }
 0x3ac   :  { %v1345_v10 = vsel %vm1344_vm8, %v1869_v15, %v1341_v45  ;;  %v1368_v0 = vmul.f32 %v1871_v16, %v1367_v58  ;;  %1876 = vrsqrt.f32 %v2889_v13  ;;  %vm1354_vm14 = vmor %vm1352_vm12, %vm1353_vm10  ;;  %vm1382_vm4 = vweird.f32 %v2889_v13 }
 0x3ad   :  { %v1348_v30 = vmul.f32 %v1873_v46, %v1347_v49  ;;  %v1496_v3 = vmul.f32 %v1345_v10, %v2750_v35 }
 0x3ae   :  { %v1369_v42 = vmul.f32 0.5, %v1368_v0  ;;  %v1273_v36 = vpop.xlane.xlu2 %1272 }
 0x3af   :  { %v1349_v1 = vmul.f32 0.5, %v1348_v30  ;;  %v1309_v19 = vmul.f32 %v1273_v36, %v2042_v20  ;;  %v1515_v37 = vmul.f32 %v2894_v26, %v1496_v3 }
 0x3b0   :  { %v1370_v34 = vsub.f32 1.5, %v1369_v42 }
 0x3b1   :  { %v1875_v35 = vpop.eup %1874  ;;  %v1350_v2 = vsub.f32 1.5, %v1349_v1  ;;  %v1325_v5 = vadd.f32 1e-05, %v1309_v19  ;;  %v1534_v39 = vadd.f32 %v2901_v31, %v1515_v37 }
 0x3b2   :  { %v1877_v41 = vpop.eup %1876  ;;  %v1371_v27 = vmul.f32 %v1871_v16, %v1370_v34  ;;  %v1357_v43 = vmul.f32 %v1875_v35, %v1322_v44  ;;  %vm1363_vm15 = vweird.f32 %v1875_v35 }
 0x3b3   :  { %v1351_v14 = vmul.f32 %v1873_v46, %v1350_v2  ;;  %v1377_v63 = vmul.f32 %v1877_v41, %v2889_v13  ;;  %1878 = vrsqrt.f32 %v1325_v5  ;;  %v1554_v53 = vmul.f32 %v2908_v12, %v1534_v39  ;;  %vm1364_vm3 = vmor %vm1362_vm2, %vm1363_vm15 }
 0x3b4   :  { %v1375_v25 = vsel %vm1374_vm13, %v1871_v16, %v1371_v27  ;;  %v1358_v21 = vmul.f32 %v1875_v35, %v1357_v43  ;;  %vm1383_vm1 = vweird.f32 %v1877_v41  ;;  %vm1392_vm7 = vweird.f32 %v1325_v5 }
 0x3b5   :  { %v1355_v33 = vsel %vm1354_vm14, %v1873_v46, %v1351_v14  ;;  %v1378_v6 = vmul.f32 %v1877_v41, %v1377_v63  ;;  %v1499_v32 = vmul.f32 %v1375_v25, %v2767_v9  ;;  %v1570_v47 = vsel %vm61_vm0, %v1554_v53, 0.0  ;;  %vm1384_vm5 = vmor %vm1382_vm4, %vm1383_vm1 }
 0x3b6   :  { %v1359_v15 = vmul.f32 0.5, %v1358_v21  ;;  %v1497_v40 = vmul.f32 %v1355_v33, %v2775_v59  ;;  %1571 = vadd.xlane.f32.xlu1 %v1570_v47 }
 0x3b7   :  { %v1379_v55 = vmul.f32 0.5, %v1378_v6  ;;  %v1518_v61 = vmul.f32 %v2894_v26, %v1499_v32 }
 0x3b8   :  { %v1360_v11 = vsub.f32 1.5, %v1359_v15  ;;  %v1516_v8 = vmul.f32 %v2894_v26, %v1497_v40 }
 0x3b9   :  { %v1879_v51 = vpop.eup %1878  ;;  %v1380_v52 = vsub.f32 1.5, %v1379_v55  ;;  %v1537_v24 = vadd.f32 %v2901_v31, %v1518_v61 }
 0x3ba   :  { %v1361_v60 = vmul.f32 %v1875_v35, %v1360_v11  ;;  %v1387_v9 = vmul.f32 %v1879_v51, %v1325_v5  ;;  %v1535_v50 = vadd.f32 %v2901_v31, %v1516_v8  ;;  %vm1393_vm6 = vweird.f32 %v1879_v51 }
 0x3bb   :  { %v1381_v59 = vmul.f32 %v1877_v41, %v1380_v52  ;;  %v1557_v56 = vmul.f32 %v2908_v12, %v1537_v24  ;;  %vm1394_vm8 = vmor %vm1392_vm7, %vm1393_vm6 }
 0x3bc   :  { %v1365_v16 = vsel %vm1364_vm3, %v1875_v35, %v1361_v60  ;;  %v1388_v46 = vmul.f32 %v1879_v51, %v1387_v9  ;;  %v1555_v45 = vmul.f32 %v2908_v12, %v1535_v50 }
 0x3bd   :  { %v1385_v58 = vsel %vm1384_vm5, %v1877_v41, %v1381_v59  ;;  %v1579_v49 = vsel %vm61_vm0, %v1557_v56, 0.0  ;;  %v1498_v10 = vmul.f32 %v1365_v16, %v2790_v28 }
 0x3be   :  { %v1389_v44 = vmul.f32 0.5, %v1388_v46  ;;  %v1573_v0 = vsel %vm61_vm0, %v1555_v45, 0.0  ;;  %v1500_v30 = vmul.f32 %v1385_v58, %v2798_v48  ;;  %1580 = vadd.xlane.f32.xlu1 %v1579_v49 }
 0x3bf   :  { %1574 = vadd.xlane.f32.xlu2 %v1573_v0  ;;  %v1517_v13 = vmul.f32 %v2894_v26, %v1498_v10 }
 0x3c0   :  { %v1390_v3 = vsub.f32 1.5, %v1389_v44  ;;  %v1519_v42 = vmul.f32 %v2894_v26, %v1500_v30 }
 0x3c1   :  { %v1536_v36 = vadd.f32 %v2901_v31, %v1517_v13 }
 0x3c2   :  { %v1391_v1 = vmul.f32 %v1879_v51, %v1390_v3  ;;  %v1538_v19 = vadd.f32 %v2901_v31, %v1519_v42 }
 0x3c3   :  { %v1556_v28 = vmul.f32 %v2908_v12, %v1536_v36 }
 0x3c4   :  { %v1395_v37 = vsel %vm1394_vm8, %v1879_v51, %v1391_v1  ;;  %v1558_v48 = vmul.f32 %v2908_v12, %v1538_v19 }
 0x3c5   :  { %v1576_v34 = vsel %vm61_vm0, %v1556_v28, 0.0  ;;  %v1501_v35 = vmul.f32 %v1395_v37, %v2807_v57 }
 0x3c6   :  { %1577 = vadd.xlane.f32.xlu0 %v1576_v34  ;;  %v1582_v2 = vsel %vm61_vm0, %v1558_v48, 0.0 }
 0x3c7   :  { %1583 = vadd.xlane.f32.xlu2 %v1582_v2  ;;  %v1520_v39 = vmul.f32 %v2894_v26, %v1501_v35 }
 0x3c9   :  { %v1276_v41 = vpop.xlane.xlu0 %1275  ;;  %v1539_v27 = vadd.f32 %v2901_v31, %v1520_v39 }
 0x3ca   :  { %v1310_v5 = vmul.f32 %v1276_v41, %v2042_v20 }
 0x3cb   :  { %v1559_v14 = vmul.f32 %v2908_v12, %v1539_v27 }
 0x3cc   :  { %v1326_v43 = vadd.f32 1e-05, %v1310_v5 }
 0x3cd   :  { %v1585_v63 = vsel %vm61_vm0, %v1559_v14, 0.0 }
 0x3ce   :  { %1880 = vrsqrt.f32 %v1326_v43  ;;  %1586 = vadd.xlane.f32.xlu0 %v1585_v63  ;;  %vm1402_vm10 = vweird.f32 %v1326_v43 }
 0x3d1   :  { %v1279_v25 = vpop.xlane.xlu1 %1278 }
 0x3d2   :  { %v1311_v57 = vmul.f32 %v1279_v25, %v2042_v20 }
 0x3d4   :  { %v1881_v21 = vpop.eup %1880  ;;  %v1327_v53 = vadd.f32 1e-05, %v1311_v57 }
 0x3d5   :  { %v1397_v33 = vmul.f32 %v1881_v21, %v1326_v43  ;;  %vm1403_vm9 = vweird.f32 %v1881_v21 }
 0x3d6   :  { %1882 = vrsqrt.f32 %v1327_v53  ;;  %vm1404_vm11 = vmor %vm1402_vm10, %vm1403_vm9  ;;  %vm1412_vm13 = vweird.f32 %v1327_v53 }
 0x3d7   :  { %v1398_v6 = vmul.f32 %v1881_v21, %v1397_v33 }
 0x3d9   :  { %v1399_v32 = vmul.f32 0.5, %v1398_v6 }
 0x3db   :  { %v1400_v15 = vsub.f32 1.5, %v1399_v32 }
 0x3dc   :  { %v1883_v47 = vpop.eup %1882 }
 0x3dd   :  { %v1401_v40 = vmul.f32 %v1881_v21, %v1400_v15  ;;  %v1407_v55 = vmul.f32 %v1883_v47, %v1327_v53  ;;  %vm1413_vm12 = vweird.f32 %v1883_v47 }
 0x3de   :  { %vm1414_vm14 = vmor %vm1412_vm13, %vm1413_vm12 }
 0x3df   :  { %v1405_v61 = vsel %vm1404_vm11, %v1881_v21, %v1401_v40  ;;  %v1408_v11 = vmul.f32 %v1883_v47, %v1407_v55 }
 0x3e0   :  { %v1502_v8 = vmul.f32 %v1405_v61, %v2816_v23 }
 0x3e1   :  { %v1409_v51 = vmul.f32 0.5, %v1408_v11  ;;  %v1282_v52 = vpop.xlane.xlu2 %1281 }
 0x3e2   :  { %v1521_v24 = vmul.f32 %v2894_v26, %v1502_v8  ;;  %v1312_v9 = vmul.f32 %v1282_v52, %v2042_v20 }
 0x3e3   :  { %v1410_v60 = vsub.f32 1.5, %v1409_v51 }
 0x3e4   :  { %v1540_v50 = vadd.f32 %v2901_v31, %v1521_v24  ;;  %v1328_v56 = vadd.f32 1e-05, %v1312_v9 }
 0x3e5   :  { %v1411_v59 = vmul.f32 %v1883_v47, %v1410_v60 }
 0x3e6   :  { %v1560_v16 = vmul.f32 %v2908_v12, %v1540_v50  ;;  %1884 = vrsqrt.f32 %v1328_v56  ;;  %vm1422_vm1 = vweird.f32 %v1328_v56 }
 0x3e7   :  { %v1415_v46 = vsel %vm1414_vm14, %v1883_v47, %v1411_v59 }
 0x3e8   :  { %v1588_v23 = vsel %vm61_vm0, %v1560_v16, 0.0  ;;  %v1503_v45 = vmul.f32 %v1415_v46, %v2823_v38 }
 0x3e9   :  { %1589 = vadd.xlane.f32.xlu1 %v1588_v23  ;;  %v1285_v58 = vpop.xlane.xlu0 %1284 }
 0x3ea   :  { %v1522_v49 = vmul.f32 %v2894_v26, %v1503_v45  ;;  %v1313_v10 = vmul.f32 %v1285_v58, %v2042_v20 }
 0x3ec   :  { %v1541_v44 = vadd.f32 %v2901_v31, %v1522_v49  ;;  %v1885_v0 = vpop.eup %1884  ;;  %v1329_v30 = vadd.f32 1e-05, %v1313_v10 }
 0x3ed   :  { %v1417_v13 = vmul.f32 %v1885_v0, %v1328_v56  ;;  %vm1423_vm15 = vweird.f32 %v1885_v0 }
 0x3ee   :  { %v1561_v3 = vmul.f32 %v2908_v12, %v1541_v44  ;;  %1886 = vrsqrt.f32 %v1329_v30  ;;  %vm1424_vm2 = vmor %vm1422_vm1, %vm1423_vm15  ;;  %vm1432_vm4 = vweird.f32 %v1329_v30 }
 0x3ef   :  { %v1418_v42 = vmul.f32 %v1885_v0, %v1417_v13 }
 0x3f0   :  { %v1591_v36 = vsel %vm61_vm0, %v1561_v3, 0.0 }
 0x3f1   :  { %1592 = vadd.xlane.f32.xlu2 %v1591_v36  ;;  %v1419_v1 = vmul.f32 0.5, %v1418_v42  ;;  %v1288_v38 = vpop.xlane.xlu1 %1287 }
 0x3f2   :  { %v1314_v19 = vmul.f32 %v1288_v38, %v2042_v20 }
 0x3f3   :  { %v1420_v28 = vsub.f32 1.5, %v1419_v1 }
 0x3f4   :  { %v1887_v37 = vpop.eup %1886  ;;  %v1330_v48 = vadd.f32 1e-05, %v1314_v19 }
 0x3f5   :  { %v1421_v34 = vmul.f32 %v1885_v0, %v1420_v28  ;;  %v1427_v35 = vmul.f32 %v1887_v37, %v1329_v30  ;;  %vm1433_vm3 = vweird.f32 %v1887_v37 }
 0x3f6   :  { %1888 = vrsqrt.f32 %v1330_v48  ;;  %vm1434_vm5 = vmor %vm1432_vm4, %vm1433_vm3  ;;  %vm1442_vm7 = vweird.f32 %v1330_v48 }
 0x3f7   :  { %v1425_v2 = vsel %vm1424_vm2, %v1885_v0, %v1421_v34  ;;  %v1428_v39 = vmul.f32 %v1887_v37, %v1427_v35 }
 0x3f8   :  { %v1504_v41 = vmul.f32 %v1425_v2, %v2830_v54 }
 0x3f9   :  { %v1429_v5 = vmul.f32 0.5, %v1428_v39  ;;  %v1291_v27 = vpop.xlane.xlu2 %1290 }
 0x3fa   :  { %v1315_v43 = vmul.f32 %v1291_v27, %v2042_v20  ;;  %v1523_v14 = vmul.f32 %v2894_v26, %v1504_v41 }
 0x3fb   :  { %v1430_v63 = vsub.f32 1.5, %v1429_v5 }
 0x3fc   :  { %v1889_v25 = vpop.eup %1888  ;;  %v1331_v57 = vadd.f32 1e-05, %v1315_v43  ;;  %v1542_v21 = vadd.f32 %v2901_v31, %v1523_v14 }
 0x3fd   :  { %v1431_v53 = vmul.f32 %v1887_v37, %v1430_v63  ;;  %v1437_v33 = vmul.f32 %v1889_v25, %v1330_v48  ;;  %vm1443_vm6 = vweird.f32 %v1889_v25 }
 0x3fe   :  { %1890 = vrsqrt.f32 %v1331_v57  ;;  %v1562_v6 = vmul.f32 %v2908_v12, %v1542_v21  ;;  %vm1444_vm8 = vmor %vm1442_vm7, %vm1443_vm6  ;;  %vm1452_vm10 = vweird.f32 %v1331_v57 }
 0x3ff   :  { %v1435_v54 = vsel %vm1434_vm5, %v1887_v37, %v1431_v53  ;;  %v1438_v32 = vmul.f32 %v1889_v25, %v1437_v33 }
 0x400   :  { %v1594_v15 = vsel %vm61_vm0, %v1562_v6, 0.0  ;;  %v1505_v47 = vmul.f32 %v1435_v54, %v2837_v18 }
 0x401   :  { %v1439_v40 = vmul.f32 0.5, %v1438_v32  ;;  %1595 = vadd.xlane.f32.xlu0 %v1594_v15  ;;  %v1294_v55 = vpop.xlane.xlu0 %1293 }
 0x402   :  { %v1316_v61 = vmul.f32 %v1294_v55, %v2042_v20  ;;  %v1524_v11 = vmul.f32 %v2894_v26, %v1505_v47 }
 0x403   :  { %v1440_v8 = vsub.f32 1.5, %v1439_v40 }
 0x404   :  { %v1891_v51 = vpop.eup %1890  ;;  %v1332_v52 = vadd.f32 1e-05, %v1316_v61  ;;  %v1543_v24 = vadd.f32 %v2901_v31, %v1524_v11 }
 0x405   :  { %v1441_v60 = vmul.f32 %v1889_v25, %v1440_v8  ;;  %v1447_v9 = vmul.f32 %v1891_v51, %v1331_v57  ;;  %vm1453_vm9 = vweird.f32 %v1891_v51 }
 0x406   :  { %1892 = vrsqrt.f32 %v1332_v52  ;;  %v1563_v18 = vmul.f32 %v2908_v12, %v1543_v24  ;;  %vm1454_vm11 = vmor %vm1452_vm10, %vm1453_vm9  ;;  %vm1462_vm13 = vweird.f32 %v1332_v52  ;;  %vm1661_vm9 = vcmask 195712  }
 0x407   :  { %v1445_v50 = vsel %vm1444_vm8, %v1889_v25, %v1441_v60  ;;  %v1448_v59 = vmul.f32 %v1891_v51, %v1447_v9  ;;  %vm1665_vm10 = vcmask 261312  }
 0x408   :  { %v1597_v56 = vsel %vm61_vm0, %v1563_v18, 0.0  ;;  %v1506_v16 = vmul.f32 %v1445_v50, %v2844_v62 }
 0x409   :  { %v1449_v46 = vmul.f32 0.5, %v1448_v59  ;;  %v1297_v23 = vpop.xlane.xlu1 %1296  ;;  %1598 = vadd.xlane.f32.xlu1 %v1597_v56 }
 0x40a   :  { %v1317_v45 = vmul.f32 %v1297_v23, %v2042_v20  ;;  %v1525_v58 = vmul.f32 %v2894_v26, %v1506_v16 }
 0x40b   :  { %v1450_v49 = vsub.f32 1.5, %v1449_v46 }
 0x40c   :  { %v1893_v10 = vpop.eup %1892  ;;  %v1333_v44 = vadd.f32 1e-05, %v1317_v45  ;;  %v1544_v0 = vadd.f32 %v2901_v31, %v1525_v58 }
 0x40d   :  { %v1451_v30 = vmul.f32 %v1891_v51, %v1450_v49  ;;  %v1457_v13 = vmul.f32 %v1893_v10, %v1332_v52  ;;  %vm1463_vm12 = vweird.f32 %v1893_v10 }
 0x40e   :  { %1894 = vrsqrt.f32 %v1333_v44  ;;  %v1564_v62 = vmul.f32 %v2908_v12, %v1544_v0  ;;  %vm1464_vm14 = vmor %vm1462_vm13, %vm1463_vm12  ;;  %vm1472_vm1 = vweird.f32 %v1333_v44  ;;  %vm1673_vm12 = vcmask 392512  }
 0x40f   :  { %v1455_v3 = vsel %vm1454_vm11, %v1891_v51, %v1451_v30  ;;  %v1458_v42 = vmul.f32 %v1893_v10, %v1457_v13  ;;  %vm1669_vm11 = vcmask 326912   ;;  %vm1677_vm13 = vcmask 458112  }
 0x410   :  { %v1600_v36 = vsel %vm61_vm0, %v1564_v62, 0.0  ;;  %v1507_v1 = vmul.f32 %v1455_v3, %v2851_v4 }
 0x411   :  { %v1459_v38 = vmul.f32 0.5, %v1458_v42  ;;  %v1300_v19 = vpop.xlane.xlu2 %1299  ;;  %1601 = vadd.xlane.f32.xlu2 %v1600_v36 }
 0x412   :  { %v1318_v28 = vmul.f32 %v1300_v19, %v2042_v20  ;;  %v1526_v37 = vmul.f32 %v2894_v26, %v1507_v1  ;;  %v1652_v19 = vlaneseq }
 0x413   :  { %v1460_v48 = vsub.f32 1.5, %v1459_v38 }
 0x414   :  { %v1895_v34 = vpop.eup %1894  ;;  %v1334_v35 = vadd.f32 1e-05, %v1318_v28  ;;  %v1545_v2 = vadd.f32 %v2901_v31, %v1526_v37  ;;  %v3000_v28 = vand.u32 127, %v1652_v19 }
 0x415   :  { %v1461_v39 = vmul.f32 %v1893_v10, %v1460_v48  ;;  %v1467_v41 = vmul.f32 %v1895_v34, %v1333_v44  ;;  %vm1473_vm15 = vweird.f32 %v1895_v34 }
 0x416   :  { %1896 = vrsqrt.f32 %v1334_v35  ;;  %v1565_v4 = vmul.f32 %v2908_v12, %v1545_v2  ;;  %vm1474_vm2 = vmor %vm1472_vm1, %vm1473_vm15  ;;  %vm1482_vm4 = vweird.f32 %v1334_v35  ;;  %v1659_v48 = vadd.s32 4294967280, %v3000_v28 }
 0x417   :  { %v1465_v5 = vsel %vm1464_vm14, %v1893_v10, %v1461_v39  ;;  %v1468_v27 = vmul.f32 %v1895_v34, %v1467_v41  ;;  %vm1681_vm14 = vcmask 523712   ;;  %vm1685_vm15 = vcmask 589312  }
 0x418   :  { %v1603_v43 = vsel %vm61_vm0, %v1565_v4, 0.0  ;;  %v1508_v14 = vmul.f32 %v1465_v5, %v2858_v17  ;;  %v1663_v5 = vadd.s32 4294967272, %v3000_v28  ;;  %vm1689_vm1 = vcmask 654912  }
 0x419   :  { %v1469_v63 = vmul.f32 0.5, %v1468_v27  ;;  %1604 = vadd.xlane.f32.xlu0 %v1603_v43  ;;  %v1303_v25 = vpop.xlane.xlu0 %1302  ;;  %v1711_v19 = vadd.s32 4294967176, %v3000_v28 }
 0x41a   :  { %v1319_v57 = vmul.f32 %v1303_v25, %v2042_v20  ;;  %v1527_v21 = vmul.f32 %v2894_v26, %v1508_v14 }
 0x41b   :  { %v1470_v53 = vsub.f32 1.5, %v1469_v63  ;;  %v1667_v63 = vadd.s32 4294967264, %v3000_v28 }
 0x41c   :  { %v1897_v33 = vpop.eup %1896  ;;  %v1335_v6 = vadd.f32 1e-05, %v1319_v57  ;;  %v1546_v54 = vadd.f32 %v2901_v31, %v1527_v21 }
 0x41d   :  { %v1471_v32 = vmul.f32 %v1895_v34, %v1470_v53  ;;  %v1477_v15 = vmul.f32 %v1897_v33, %v1334_v35  ;;  %vm1483_vm3 = vweird.f32 %v1897_v33  ;;  %v1671_v53 = vadd.s32 4294967256, %v3000_v28 }
 0x41e   :  { %1898 = vrsqrt.f32 %v1335_v6  ;;  %v1566_v17 = vmul.f32 %v2908_v12, %v1546_v54  ;;  %vm1484_vm5 = vmor %vm1482_vm4, %vm1483_vm3  ;;  %vm1492_vm7 = vweird.f32 %v1335_v6  ;;  %vm1697_vm3 = vcmask 786112  }
 0x41f   :  { %v1475_v47 = vsel %vm1474_vm2, %v1895_v34, %v1471_v32  ;;  %v1478_v40 = vmul.f32 %v1897_v33, %v1477_v15  ;;  %v1675_v15 = vadd.s32 4294967248, %v3000_v28  ;;  %vm1693_vm2 = vcmask 720512  }
 0x420   :  { %v1606_v55 = vsel %vm61_vm0, %v1566_v17, 0.0  ;;  %v1509_v20 = vmul.f32 %v1475_v47, %v2865_v22  ;;  %vm1701_vm4 = vcmask 851712  }
 0x421   :  { %v1479_v61 = vmul.f32 0.5, %v1478_v40  ;;  %1607 = vadd.xlane.f32.xlu1 %v1606_v55  ;;  %v1679_v55 = vadd.s32 4294967240, %v3000_v28 }
 0x422   :  { %v1528_v11 = vmul.f32 %v2894_v26, %v1509_v20 }
 0x423   :  { %v1480_v8 = vsub.f32 1.5, %v1479_v61  ;;  %v1683_v61 = vadd.s32 4294967232, %v3000_v28 }
 0x424   :  { %v1899_v51 = vpop.eup %1898  ;;  %v1547_v52 = vadd.f32 %v2901_v31, %v1528_v11 }
 0x425   :  { %v1481_v24 = vmul.f32 %v1897_v33, %v1480_v8  ;;  %v1487_v60 = vmul.f32 %v1899_v51, %v1335_v6  ;;  %vm1493_vm6 = vweird.f32 %v1899_v51 }
 0x426   :  { %v1567_v9 = vmul.f32 %v2908_v12, %v1547_v52  ;;  %vm1494_vm8 = vmor %vm1492_vm7, %vm1493_vm6  ;;  %vm1709_vm6 = vcmask 982912   ;;  %vm1713_vm7 = vcmask 1048512  }
 0x427   :  { %v1485_v18 = vsel %vm1484_vm5, %v1897_v33, %v1481_v24  ;;  %v1488_v50 = vmul.f32 %v1899_v51, %v1487_v60  ;;  %vm1705_vm5 = vcmask 917312  }
 0x428   :  { %v1609_v59 = vsel %vm61_vm0, %v1567_v9, 0.0  ;;  %v1510_v22 = vmul.f32 %v1485_v18, %v2873_v29  ;;  %v1691_v9 = vadd.s32 4294967216, %v3000_v28 }
 0x429   :  { %v1489_v56 = vmul.f32 0.5, %v1488_v50  ;;  %1610 = vadd.xlane.f32.xlu2 %v1609_v59  ;;  %v1572_v62 = vpop.xlane.xlu1 %1571 }
 0x42a   :  { %v1529_v16 = vmul.f32 %v2894_v26, %v1510_v22 }
 0x42b   :  { %v1490_v46 = vsub.f32 1.5, %v1489_v56  ;;  %v1695_v56 = vadd.s32 4294967208, %v3000_v28 }
 0x42c   :  { %v1548_v23 = vadd.f32 %v2901_v31, %v1529_v16 }
 0x42d   :  { %v1491_v45 = vmul.f32 %v1899_v51, %v1490_v46 }
 0x42e   :  { %v1568_v58 = vmul.f32 %v2908_v12, %v1548_v23 }
 0x42f   :  { %v1495_v49 = vsel %vm1494_vm8, %v1899_v51, %v1491_v45  ;;  %v1687_v51 = vadd.s32 4294967224, %v3000_v28  ;;  %v1699_v45 = vadd.s32 4294967200, %v3000_v28 }
 0x430   :  { %v1612_v10 = vsel %vm61_vm0, %v1568_v58, 0.0  ;;  %v1511_v44 = vmul.f32 %v1495_v49, %v2882_v7  ;;  %v3005_v7 = vstv %s3057_s10 }
 0x431   :  { %1613 = vadd.xlane.f32.xlu0 %v1612_v10  ;;  %v1581_v36 = vpop.xlane.xlu1 %1580  ;;  %v1620_v2 = vadd.f32 %v3005_v7, %v1572_v62  ;;  %v1703_v10 = vadd.s32 4294967192, %v3000_v28 }
 0x432   :  { %v1530_v29 = vmul.f32 %v2894_v26, %v1511_v44  ;;  %v1575_v3 = vpop.xlane.xlu2 %1574  ;;  %v1623_v27 = vadd.f32 %v3005_v7, %v1581_v36 }
 0x433   :  { %v1654_v4 = vperm.slane %v1620_v2, %v3000_v28 }
 0x434   :  { %v1549_v0 = vadd.f32 %v2901_v31, %v1530_v29  ;;  %v1655_v31 = vadd.s32 4294967288, %v3000_v28  ;;  %v1664_v54 = vperm.slane %v1623_v27, %v1663_v5 }
 0x436   :  { %v1569_v30 = vmul.f32 %v2908_v12, %v1549_v0  ;;  %v1621_v12 = vadd.f32 %v3005_v7, %v1575_v3 }
 0x438   :  { %v1615_v13 = vsel %vm61_vm0, %v1569_v30, 0.0  ;;  %v1656_v39 = vperm.slane %v1621_v12, %v1655_v31  ;;  %vm1657_vm0 = vcmask 130112   ;;  %v1707_v30 = vadd.s32 4294967184, %v3000_v28 }
 0x439   :  { %1616 = vadd.xlane.f32.xlu1 %v1615_v13  ;;  %v1578_v42 = vpop.xlane.xlu0 %1577 }
 0x43a   :  { %v1584_v1 = vpop.xlane.xlu2 %1583  ;;  %v1622_v34 = vadd.f32 %v3005_v7, %v1578_v42  ;;  %v1658_v14 = vsel %vm1657_vm0, %v1656_v39, %v1654_v4 }
 0x43b   :  { %v1624_v57 = vadd.f32 %v3005_v7, %v1584_v1 }
 0x43c   :  { %v1660_v41 = vperm.slane %v1622_v34, %v1659_v48 }
 0x43d   :  { %v1668_v47 = vperm.slane %v1624_v57, %v1667_v63 }
 0x43e   :  { %v1662_v21 = vsel %vm1661_vm9, %v1660_v41, %v1658_v14 }
 0x43f   :  { %v1666_v32 = vsel %vm1665_vm10, %v1664_v54, %v1662_v21 }
 0x440   :  { %v1670_v8 = vsel %vm1669_vm11, %v1668_v47, %v1666_v32 }
 0x441   :  { %v1587_v38 = vpop.xlane.xlu0 %1586 }
 0x442   :  { %v1625_v33 = vadd.f32 %v3005_v7, %v1587_v38 }
 0x444   :  { %v1672_v40 = vperm.slane %v1625_v33, %v1671_v53 }
 0x446   :  { %v1674_v59 = vsel %vm1673_vm12, %v1672_v40, %v1670_v8 }
 0x45c   :  { %v1590_v26 = vpop.xlane.xlu1 %1589 }
 0x45d   :  { %v1626_v17 = vadd.f32 %v3005_v7, %v1590_v26 }
 0x45f   :  { %v1676_v60 = vperm.slane %v1626_v17, %v1675_v15 }
 0x461   :  { %v1678_v29 = vsel %vm1677_vm13, %v1676_v60, %v1674_v59 }
 0x464   :  { %v1593_v37 = vpop.xlane.xlu2 %1592 }
 0x465   :  { %v1627_v20 = vadd.f32 %v3005_v7, %v1593_v37 }
 0x467   :  { %v1680_v22 = vperm.slane %v1627_v20, %v1679_v55 }
 0x469   :  { %v1682_v62 = vsel %vm1681_vm14, %v1680_v22, %v1678_v29 }
 0x474   :  { %v1596_v35 = vpop.xlane.xlu0 %1595 }
 0x475   :  { %v1628_v11 = vadd.f32 %v3005_v7, %v1596_v35 }
 0x477   :  { %v1684_v23 = vperm.slane %v1628_v11, %v1683_v61 }
 0x479   :  { %v1686_v42 = vsel %vm1685_vm15, %v1684_v23, %v1682_v62 }
 0x47c   :  { %v1599_v43 = vpop.xlane.xlu1 %1598 }
 0x47d   :  { %v1629_v52 = vadd.f32 %v3005_v7, %v1599_v43 }
 0x47f   :  { %v1688_v49 = vperm.slane %v1629_v52, %v1687_v51 }
 0x481   :  { %v1690_v1 = vsel %vm1689_vm1, %v1688_v49, %v1686_v42 }
 0x484   :  { %v1602_v25 = vpop.xlane.xlu2 %1601 }
 0x485   :  { %v1630_v18 = vadd.f32 %v3005_v7, %v1602_v25 }
 0x487   :  { %v1692_v0 = vperm.slane %v1630_v18, %v1691_v9 }
 0x489   :  { %v1694_v26 = vsel %vm1693_vm2, %v1692_v0, %v1690_v1 }
 0x48c   :  { %v1605_v6 = vpop.xlane.xlu0 %1604 }
 0x48d   :  { %v1631_v16 = vadd.f32 %v3005_v7, %v1605_v6 }
 0x48f   :  { %v1696_v3 = vperm.slane %v1631_v16, %v1695_v56 }
 0x491   :  { %v1698_v37 = vsel %vm1697_vm3, %v1696_v3, %v1694_v26 }
 0x494   :  { %v1608_v24 = vpop.xlane.xlu1 %1607 }
 0x495   :  { %v1632_v58 = vadd.f32 %v3005_v7, %v1608_v24 }
 0x497   :  { %v1700_v36 = vperm.slane %v1632_v58, %v1699_v45 }
 0x499   :  { %v1702_v34 = vsel %vm1701_vm4, %v1700_v36, %v1698_v37 }
 0x49c   :  { %v1611_v50 = vpop.xlane.xlu2 %1610 }
 0x49d   :  { %v1633_v44 = vadd.f32 %v3005_v7, %v1611_v50 }
 0x49f   :  { %v1704_v38 = vperm.slane %v1633_v44, %v1703_v10 }
 0x4a1   :  { %v1706_v35 = vsel %vm1705_vm5, %v1704_v38, %v1702_v34 }
 0x4a4   :  { %v1614_v46 = vpop.xlane.xlu0 %1613 }
 0x4a5   :  { %v1634_v13 = vadd.f32 %v3005_v7, %v1614_v46 }
 0x4a7   :  { %v1708_v31 = vperm.slane %v1634_v13, %v1707_v30 }
 0x4a9   :  { %v1710_v39 = vsel %vm1709_vm6, %v1708_v31, %v1706_v35 }
 0x4ac   :  { %v1617_v12 = vpop.xlane.xlu1 %1616 }
 0x4ad   :  { %v1635_v48 = vadd.f32 %v3005_v7, %v1617_v12 }
 0x4af   :  { %v1712_v2 = vperm.slane %v1635_v48, %v1711_v19 }
 0x4b1   :  { %v1714_v41 = vsel %vm1713_vm7, %v1712_v2, %v1710_v39 }
 0x4b2   :  { %1716 = vst [vmem:[%s3059_s12] sm:$0x1] %v1714_v41 }
 0x4b3   :  { %1720 = vsyncadd [#allocation4], 1792  ;;  %s1723_s24 = sshll.u32 %s3058_s11, 4  ;;  %s1943_s25 = smov [#allocation3]   ;;  %s1724_s24 = int_to_ptr.hbm [resolvable:$true] %s1723_s24 }
 0x4b4   :  { %s1721_s26 = sshll.u32 %s1943_s25, 4  ;;  %s1944_s27 = smov 128   ;;  %s1722_s26 = int_to_ptr.vmem [resolvable:$true] %s1721_s26 }
 0x4b5   :  { %s1945_s28 = smov 8  }
 0x4b6   :  { %1729 = dma.vmem_to_hbm [thread:$0]  %s1722_s26, 256, %s1724_s24, [#allocation4], %s1944_s27, %s1944_s27, %s1945_s28  }
 0x4b7   :  { %1940 = dma.done.wait [#allocation4], 2048  }
 0x4b8   :  { %1941 = vsyncadd [#allocation4], 4294965248 }
 0x4b9   :  { %1738 = vsyncpa [#allocation4], 1 }

</bundles_post_ra>
